<compile_context>
chip_gen: v7x
topology: tpu7x:2x2x1
jax: 0.10.0
libtpu: 0.0.40
codegen_flags: <defaults>
</compile_context>

<pallas_src>
import functools

import jax
import jax.numpy as jnp
from jax import lax
from jax.experimental import pallas as pl
from jax.experimental.pallas import tpu as pltpu

EPS = 1e-5       # layer_norm_eps
NUM_SP = 16      # rows in the packed per-layer small-parameter table


def _layernorm(x, w, b):
    mu = jnp.mean(x, axis=-1, keepdims=True)
    var = jnp.mean(jnp.square(x - mu), axis=-1, keepdims=True)
    return (x - mu) * lax.rsqrt(var + EPS) * w + b


def _vmem_limit(needed_bytes):
    """Explicit VMEM limit: needed (with margin), clamped to physical VMEM."""
    try:
        cap = pltpu.get_tpu_info().vmem_capacity_bytes
    except Exception:  # pragma: no cover - conservative fallback (v7x size)
        cap = 64 << 20
    want = int(needed_bytes * 1.5) + (8 << 20)
    want = max(want, 32 << 20)
    return int(min(want, cap - (2 << 20)))


def _pick_tile(n, cap):
    if n <= cap:
        return n
    for c in (4096, 2048, 1024, 512, 256, 128, 64, 32, 16, 8):
        if c <= cap and n % c == 0:
            return c
    return n


def _choose_bsub(b_pad, t, h):
    """Largest batch sub-block (multiple of 8, divides b_pad) whose resident
    activations fit a conservative VMEM share. Fewest blocks => weights are
    streamed from HBM the fewest times (matters most on v5e bandwidth)."""
    budget = 24 << 20   # activations' share of VMEM (conservative for v7x)
    for bsub in range(b_pad, 7, -8):
        if b_pad % bsub == 0 and 6 * (t * bsub) * h * 4 <= budget:
            return bsub
    return 8
    # TODO(synk): on v7x (2 TensorCores) prefer nb >= 2 batch blocks so the
    # "parallel" batch axis keeps both cores busy.


# ---------------------------------------------------------------------------
# Fused per-layer-stack kernel.
#
# grid = (num_batch_blocks, num_layers); batch blocks are "parallel", the layer
# axis is "arbitrary".  The activation block is laid out (T*Bsub, H) with rows
# ordered time-major / batch-minor, so:
#   * token shift == roll by Bsub rows (+ zero the first Bsub rows),
#   * WKV step t  == contiguous rows [t*Bsub, (t+1)*Bsub).
# The output block (constant index over the layer axis) is the resident VMEM
# activation accumulator; it is only written back to HBM once per batch block.
# ---------------------------------------------------------------------------
def rwkv_stack_kernel(x_ref, sp_ref,
                      wk_ref, wv_ref, wr_ref, wo_ref,
                      cwk_ref, cwv_ref, cwr_ref,
                      out_ref,
                      k_s, v_s,
                      *, bsub, unroll, approx_recip):
    layer = pl.program_id(1)
    _, R, H = out_ref.shape        # R = T * bsub
    T = R // bsub

    # Load activations into the resident output block at the first layer.
    @pl.when(layer == 0)
    def _load():
        out_ref[0] = x_ref[0].astype(out_ref.dtype)

    sp = sp_ref[0]                 # (NUM_SP, H) f32 per-layer vectors
    x = out_ref[0].astype(jnp.float32)                    # (R, H) f32

    # Layer-invariant token-shift mask (cheap VPU iota+compare per layer).
    # TODO(synk): could be hoisted across layers at the cost of an extra
    # (R, H) scratch buffer; kept per-layer to preserve the VMEM savings.
    row_id = lax.broadcasted_iota(jnp.int32, (R, H), 0)
    not_first = row_id >= bsub

    # ---------------- time mixing ----------------
    xln = _layernorm(x, sp[0:1, :], sp[1:2, :])
    shifted = jnp.where(not_first, pltpu.roll(xln, shift=bsub, axis=0), 0.0)

    xk = xln * sp[4:5, :] + shifted * sp[5:6, :]     # tmk / (1 - tmk)
    xv = xln * sp[6:7, :] + shifted * sp[7:8, :]     # tmv / (1 - tmv)
    xr = xln * sp[8:9, :] + shifted * sp[9:10, :]    # tmr / (1 - tmr)

    k_s[...] = jnp.dot(xk.astype(jnp.bfloat16), wk_ref[0],
                       preferred_element_type=jnp.float32)
    v_s[...] = jnp.dot(xv.astype(jnp.bfloat16), wv_ref[0],
                       preferred_element_type=jnp.float32)
    r = jax.nn.sigmoid(jnp.dot(xr.astype(jnp.bfloat16), wr_ref[0],
                               preferred_element_type=jnp.float32))

    w = sp[10:11, :]               # -exp(time_decay), precomputed on host
    u = sp[11:12, :]               # time_first

    def body(t, carry):
        aa, bb, pp = carry                           # each (bsub, H) f32
        row = pl.multiple_of(t * bsub, bsub)
        kt = k_s[pl.ds(row, bsub), :]
        vt = v_s[pl.ds(row, bsub), :]
        ww = u + kt
        qq = jnp.maximum(pp, ww)
        e1 = jnp.exp(pp - qq)
        e2 = jnp.exp(ww - qq)
        num = e1 * aa + e2 * vt
        den = e1 * bb + e2
        if approx_recip:
            wkv = num * pl.reciprocal(den, approx=True)
        else:
            wkv = num / den
        # k_s doubles as wkv storage: kt at this row was already loaded above,
        # and later iterations only ever read rows > row.
        k_s[pl.ds(row, bsub), :] = wkv
        ww2 = pp + w
        qq2 = jnp.maximum(ww2, kt)
        e1b = jnp.exp(ww2 - qq2)
        e2b = jnp.exp(kt - qq2)
        return (e1b * aa + e2b * vt, e1b * bb + e2b, qq2)

    init = (jnp.zeros((bsub, H), jnp.float32),
            jnp.zeros((bsub, H), jnp.float32),
            jnp.full((bsub, H), -1e30, jnp.float32))
    lax.fori_loop(0, T, body, init, unroll=unroll)
    # TODO(synk): the final (aa, bb, pp) carry is discarded; cross-call
    # recurrent state (use_states=True streaming) is not implemented.

    att = jnp.dot((r * k_s[...]).astype(jnp.bfloat16), wo_ref[0],
                  preferred_element_type=jnp.float32)
    x1 = x + att

    # ---------------- channel mixing ----------------
    xln2 = _layernorm(x1, sp[2:3, :], sp[3:4, :])
    shifted2 = jnp.where(not_first, pltpu.roll(xln2, shift=bsub, axis=0), 0.0)

    xk2 = xln2 * sp[12:13, :] + shifted2 * sp[13:14, :]   # cmk / (1 - cmk)
    xr2 = xln2 * sp[14:15, :] + shifted2 * sp[15:16, :]   # cmr / (1 - cmr)

    kk = jnp.dot(xk2.astype(jnp.bfloat16), cwk_ref[0],
                 preferred_element_type=jnp.float32)
    kk = jnp.square(jnp.maximum(kk, 0.0))
    gate = jax.nn.sigmoid(jnp.dot(xr2.astype(jnp.bfloat16), cwr_ref[0],
                                  preferred_element_type=jnp.float32))
    ffn = gate * jnp.dot(kk.astype(jnp.bfloat16), cwv_ref[0],
                         preferred_element_type=jnp.float32)

    # Update the resident accumulator; Pallas writes it back to HBM only when
    # the batch-block index changes (i.e. after the last layer).
    out_ref[0] = (x1 + ffn).astype(out_ref.dtype)


def run_rwkv_stack(x_blocks, stacked, bsub, approx_recip=True):
    """x_blocks: (nb, T*bsub, H) time-major activations; runs all layers."""
    nb, R, H = x_blocks.shape
    L = stacked["sp"].shape[0]
    F = stacked["cwk"].shape[2]
    T = R // bsub

    xmap = lambda n, l: (n, 0, 0)
    lmap = lambda n, l: (l, 0, 0)

    # Unroll the serial WKV loop without spilling the 64-vreg register file:
    # each live (bsub, H) f32 temporary is ~H/128 vregs.
    cap = max(1, min(T, 1024 // max(H, 1)))
    unroll = 1
    for u in range(cap, 0, -1):
        if T % u == 0:
            unroll = u
            break

    # Single-buffer the big weight blocks when double-buffering them would
    # threaten the VMEM budget (production H on v7x's 64 MiB).
    weight_bytes = (5 * H * H + 2 * H * F) * 2           # bf16 per layer
    big_weights = 2 * weight_bytes > (24 << 20)

    def wspec(shape):
        if big_weights:
            return pl.BlockSpec(shape, lmap, pipeline_mode=pl.Buffered(1))
        return pl.BlockSpec(shape, lmap)

    act_bytes = R * H * 4
    needed = (4 * act_bytes                       # in + out activation blocks
              + 2 * act_bytes                     # k_s (doubles as wkv), v_s
              + (1 if big_weights else 2) * weight_bytes
              + 2 * NUM_SP * H * 4)

    kernel = functools.partial(rwkv_stack_kernel, bsub=bsub, unroll=unroll,
                               approx_recip=approx_recip)

    return pl.pallas_call(
        kernel,
        out_shape=jax.ShapeDtypeStruct((nb, R, H), jnp.float32),
        grid_spec=pltpu.PrefetchScalarGridSpec(
            num_scalar_prefetch=0,
            grid=(nb, L),
            in_specs=[
                pl.BlockSpec((1, R, H), xmap),          # activations
                pl.BlockSpec((1, NUM_SP, H), lmap),     # packed small params
                wspec((1, H, H)),                       # wk
                wspec((1, H, H)),                       # wv
                wspec((1, H, H)),                       # wr
                wspec((1, H, H)),                       # wo
                wspec((1, H, F)),                       # cwk
                wspec((1, F, H)),                       # cwv
                wspec((1, H, H)),                       # cwr
            ],
            out_specs=pl.BlockSpec((1, R, H), xmap),
            scratch_shapes=[pltpu.VMEM((R, H), jnp.float32)] * 2,  # k(+wkv), v
        ),
        compiler_params=pltpu.CompilerParams(
            dimension_semantics=("parallel", "arbitrary"),
            vmem_limit_bytes=_vmem_limit(needed)),
    )(x_blocks, stacked["sp"], stacked["wk"], stacked["wv"], stacked["wr"],
      stacked["wo"], stacked["cwk"], stacked["cwv"], stacked["cwr"])


# ---------------------------------------------------------------------------
# Head kernel: final layer norm + vocab projection.  The LayerNorm is computed
# once per row tile (under pl.when on the innermost vocab axis) into a VMEM
# scratch and reused for every vocab tile; TR is raised toward R so the (H, V)
# output weight is re-streamed as few times as possible.
# ---------------------------------------------------------------------------
def head_kernel(x_ref, lnw_ref, lnb_ref, wout_ref, logits_ref, hidden_ref, h_s):
    @pl.when(pl.program_id(1) == 0)
    def _ln():
        x = x_ref[...].astype(jnp.float32)                # (TR, H)
        h = _layernorm(x, lnw_ref[...], lnb_ref[...])
        h_s[...] = h
        hidden_ref[...] = h.astype(hidden_ref.dtype)

    logits_ref[...] = jnp.dot(h_s[...].astype(jnp.bfloat16), wout_ref[...],
                              preferred_element_type=jnp.float32
                              ).astype(logits_ref.dtype)


def run_head(x_flat, ln_w, ln_b, w_out_t):
    R, H = x_flat.shape
    V = w_out_t.shape[1]
    TR = _pick_tile(R, 1024)
    TV = _pick_tile(V, 2048)

    needed = (2 * TR * H * 4      # x block
              + 2 * H * TV * 2    # wout block (bf16)
              + 2 * TR * TV * 4   # logits block
              + 2 * TR * H * 4    # hidden block
              + TR * H * 4        # LN scratch
              + 4 * H * 4)

    logits, hidden = pl.pallas_call(
        head_kernel,
        out_shape=(jax.ShapeDtypeStruct((R, V), jnp.float32),
                   jax.ShapeDtypeStruct((R, H), jnp.float32)),
        grid_spec=pltpu.PrefetchScalarGridSpec(
            num_scalar_prefetch=0,
            grid=(R // TR, V // TV),
            in_specs=[
                pl.BlockSpec((TR, H), lambda r, v: (r, 0)),
                pl.BlockSpec((1, H), lambda r, v: (0, 0)),
                pl.BlockSpec((1, H), lambda r, v: (0, 0)),
                pl.BlockSpec((H, TV), lambda r, v: (0, v)),
            ],
            out_specs=[
                pl.BlockSpec((TR, TV), lambda r, v: (r, v)),
                pl.BlockSpec((TR, H), lambda r, v: (r, 0)),
            ],
            scratch_shapes=[pltpu.VMEM((TR, H), jnp.float32)],
        ),
        compiler_params=pltpu.CompilerParams(
            dimension_semantics=("parallel", "arbitrary"),
            vmem_limit_bytes=_vmem_limit(needed)),
    )(x_flat, ln_w, ln_b, w_out_t)
    return logits, hidden


# ---------------------------------------------------------------------------
# Parameter initialization (mirrors _init_weights: linears/embedding N(0,0.02),
# layernorm weight=1 / bias=0).  Per-layer weights are stacked on a leading L
# axis and stored in bf16; small per-layer vectors are packed into one table.
# TODO(synk): per-generation fp8 (v7x) / int8 (v5e,v6e) weight storage with
# per-channel scales would halve weight HBM traffic and resident VMEM.
# ---------------------------------------------------------------------------
def init_model_params(key, num_layers, H, F, vocab_size):
    keys = jax.random.split(key, 2 + num_layers)
    params = {}
    params["embedding"] = 0.02 * jax.random.normal(
        keys[0], (vocab_size, H), jnp.float32)
    params["final_ln_w"] = jnp.ones((1, H), jnp.float32)
    params["final_ln_b"] = jnp.zeros((1, H), jnp.float32)
    w_out = 0.02 * jax.random.normal(keys[1], (vocab_size, H), jnp.float32)
    params["w_out_t"] = jnp.transpose(w_out).astype(jnp.bfloat16)   # (H, V)

    h_idx = jnp.arange(H, dtype=jnp.float32) / H
    sp_l, wk_l, wv_l, wr_l, wo_l, cwk_l, cwv_l, cwr_l = ([] for _ in range(8))
    for li in range(num_layers):
        lk = jax.random.split(keys[2 + li], 7)
        ratio = (li + 1) / num_layers
        tmk = h_idx * ratio
        tmv = h_idx * ratio * 0.5 + 0.25
        tmr = h_idx * 0.5 * ratio
        tdecay = -5.0 + 8.0 * h_idx
        tfirst = 0.5 * jnp.ones((H,), jnp.float32)
        cmk = h_idx * ratio
        cmr = h_idx * ratio
        sp = jnp.stack([
            jnp.ones((H,), jnp.float32),   # 0  ln1_w
            jnp.zeros((H,), jnp.float32),  # 1  ln1_b
            jnp.ones((H,), jnp.float32),   # 2  ln2_w
            jnp.zeros((H,), jnp.float32),  # 3  ln2_b
            tmk, 1.0 - tmk,                # 4, 5
            tmv, 1.0 - tmv,                # 6, 7
            tmr, 1.0 - tmr,                # 8, 9
            -jnp.exp(tdecay),              # 10 w (time decay, negative)
            tfirst,                        # 11 u (time first / bonus)
            cmk, 1.0 - cmk,                # 12, 13
            cmr, 1.0 - cmr,                # 14, 15
        ], axis=0)                          # (NUM_SP, H)
        sp_l.append(sp)
        wk_l.append(0.02 * jax.random.normal(lk[0], (H, H), jnp.float32))
        wv_l.append(0.02 * jax.random.normal(lk[1], (H, H), jnp.float32))
        wr_l.append(0.02 * jax.random.normal(lk[2], (H, H), jnp.float32))
        wo_l.append(0.02 * jax.random.normal(lk[3], (H, H), jnp.float32))
        cwk_l.append(0.02 * jax.random.normal(lk[4], (H, F), jnp.float32))
        cwv_l.append(0.02 * jax.random.normal(lk[5], (F, H), jnp.float32))
        cwr_l.append(0.02 * jax.random.normal(lk[6], (H, H), jnp.float32))

    params["stacked"] = {
        "sp":  jnp.stack(sp_l, axis=0),                      # (L, 16, H) f32
        "wk":  jnp.stack(wk_l).astype(jnp.bfloat16),         # (L, H, H) bf16
        "wv":  jnp.stack(wv_l).astype(jnp.bfloat16),
        "wr":  jnp.stack(wr_l).astype(jnp.bfloat16),
        "wo":  jnp.stack(wo_l).astype(jnp.bfloat16),
        "cwk": jnp.stack(cwk_l).astype(jnp.bfloat16),        # (L, H, F)
        "cwv": jnp.stack(cwv_l).astype(jnp.bfloat16),        # (L, F, H)
        "cwr": jnp.stack(cwr_l).astype(jnp.bfloat16),
    }
    return params


@jax.jit
def rwkv_forward(input_ids, params):
    """RWKV forward: returns (logits, hidden_states)."""
    B, T = input_ids.shape
    H = params["embedding"].shape[1]

    # Embedding lookup (plain-JAX glue).
    x = jnp.take(params["embedding"], input_ids, axis=0)     # (B, T, H)
    # TODO(synk): position embeddings / dropout are disabled by default
    # (use_position_embeddings=False, eval-mode dropout) and are omitted.

    # Pad B to a multiple of 8 so WKV slabs always fill full sublanes (padded
    # rows are zeros; every op is row-wise so they never touch real rows).
    B_pad = ((B + 7) // 8) * 8
    if B_pad != B:
        x = jnp.pad(x, ((0, B_pad - B), (0, 0), (0, 0)))

    # Batch-blocked, time-major slabs (nb, T*bsub, H): the WKV recurrence then
    # processes all bsub sequences of a timestep in one contiguous vreg slab.
    bsub = _choose_bsub(B_pad, T, H)
    nb = B_pad // bsub
    x_blocks = (x.reshape(nb, bsub, T, H)
                  .transpose(0, 2, 1, 3)
                  .reshape(nb, T * bsub, H))

    y = run_rwkv_stack(x_blocks, params["stacked"], bsub)    # (nb, T*bsub, H)

    # Back to (B*T, H) row order (b major, t minor); drop padded rows.
    y = (y.reshape(nb, T, bsub, H)
          .transpose(0, 2, 1, 3)
          .reshape(B_pad, T, H))[:B].reshape(B * T, H)

    logits_f, hidden_f = run_head(
        y, params["final_ln_w"], params["final_ln_b"], params["w_out_t"])
    V = logits_f.shape[-1]
    logits = logits_f.reshape(B, T, V)
    hidden = hidden_f.reshape(B, T, H)
    return logits, hidden


if __name__ == "__main__":
    # Small config: batch=2, seq=8, hidden=32, ffn=64, vocab=64, layers=2
    B, T, H, F, V, L = 2, 8, 32, 64, 64, 2

    key = jax.random.PRNGKey(0)
    k_ids, k_params = jax.random.split(key)
    input_ids = jax.random.randint(k_ids, (B, T), 0, V, dtype=jnp.int32)
    params = init_model_params(k_params, L, H, F, V)

    logits, hidden = rwkv_forward(input_ids, params)
    logits = jax.block_until_ready(logits)
    hidden = jax.block_until_ready(hidden)

    assert logits.shape == (B, T, V)
    assert hidden.shape == (B, T, H)
    assert bool(jnp.all(jnp.isfinite(logits)))
    assert bool(jnp.all(jnp.isfinite(hidden)))
    print("KERNEL_OK")
</pallas_src>

<mosaic_0001>
module attributes {stable_mosaic.version = 11 : i64} {
  func.func @head_kernel(%arg0: i32, %arg1: i32, %arg2: memref<16x32xf32, #tpu.memory_space<vmem>>, %arg3: memref<1x32xf32, #tpu.memory_space<vmem>>, %arg4: memref<1x32xf32, #tpu.memory_space<vmem>>, %arg5: memref<32x64xbf16, #tpu.memory_space<vmem>>, %arg6: memref<16x64xf32, #tpu.memory_space<vmem>>, %arg7: memref<16x32xf32, #tpu.memory_space<vmem>>, %arg8: memref<16x32xf32, #tpu.memory_space<vmem>>) attributes {dimension_semantics = [#tpu.dimension_semantics<parallel>, #tpu.dimension_semantics<arbitrary>], iteration_bounds = array<i64: 1, 1>, scalar_prefetch = 0 : i64, scratch_operands = 1 : i64, tpu.core_type = #tpu.core_type<tc>, window_params = [{transform_indices = @transform_0, window_bounds = array<i64: 16, 32>}, {pipeline_mode = #tpu.pipeline_mode<synchronous>, transform_indices = @transform_1, window_bounds = array<i64: 1, 32>}, {pipeline_mode = #tpu.pipeline_mode<synchronous>, transform_indices = @transform_2, window_bounds = array<i64: 1, 32>}, {transform_indices = @transform_3, window_bounds = array<i64: 32, 64>}, {transform_indices = @transform_4, window_bounds = array<i64: 16, 64>}, {transform_indices = @transform_5, window_bounds = array<i64: 16, 32>}]} {
    %c0_i32 = arith.constant 0 : i32
    %0 = arith.cmpi eq, %arg1, %c0_i32 : i32
    %1 = arith.extui %0 : i1 to i32
    %c0_i32_0 = arith.constant 0 : i32
    %2 = arith.cmpi ne, %1, %c0_i32_0 : i32
    scf.if %2 {
      %c0_6 = arith.constant 0 : index
      %c0_7 = arith.constant 0 : index
      %8 = vector.load %arg2[%c0_6, %c0_7] : memref<16x32xf32, #tpu.memory_space<vmem>>, vector<16x32xf32>
      %c0_8 = arith.constant 0 : index
      %c0_9 = arith.constant 0 : index
      %9 = vector.load %arg3[%c0_8, %c0_9] : memref<1x32xf32, #tpu.memory_space<vmem>>, vector<1x32xf32>
      %c0_10 = arith.constant 0 : index
      %c0_11 = arith.constant 0 : index
      %10 = vector.load %arg4[%c0_10, %c0_11] : memref<1x32xf32, #tpu.memory_space<vmem>>, vector<1x32xf32>
      %cst_12 = arith.constant dense<0.000000e+00> : vector<16xf32>
      %11 = vector.multi_reduction <add>, %8, %cst_12 [1] : vector<16x32xf32> to vector<16xf32>
      %12 = vector.shape_cast %11 : vector<16xf32> to vector<16x1xf32>
      %cst_13 = arith.constant 3.200000e+01 : f32
      %13 = vector.broadcast %cst_13 : f32 to vector<16x1xf32>
      %14 = arith.divf %12, %13 : vector<16x1xf32>
      %15 = vector.broadcast %14 : vector<16x1xf32> to vector<16x32xf32>
      %16 = arith.subf %8, %15 : vector<16x32xf32>
      %17 = arith.mulf %16, %16 : vector<16x32xf32>
      %cst_14 = arith.constant dense<0.000000e+00> : vector<16xf32>
      %18 = vector.multi_reduction <add>, %17, %cst_14 [1] : vector<16x32xf32> to vector<16xf32>
      %19 = vector.shape_cast %18 : vector<16xf32> to vector<16x1xf32>
      %cst_15 = arith.constant 3.200000e+01 : f32
      %20 = vector.broadcast %cst_15 : f32 to vector<16x1xf32>
      %21 = arith.divf %19, %20 : vector<16x1xf32>
      %22 = vector.broadcast %14 : vector<16x1xf32> to vector<16x32xf32>
      %23 = arith.subf %8, %22 : vector<16x32xf32>
      %cst_16 = arith.constant 9.99999974E-6 : f32
      %24 = vector.broadcast %cst_16 : f32 to vector<16x1xf32>
      %25 = arith.addf %21, %24 : vector<16x1xf32>
      %26 = math.rsqrt %25 : vector<16x1xf32>
      %27 = vector.broadcast %26 : vector<16x1xf32> to vector<16x32xf32>
      %28 = arith.mulf %23, %27 : vector<16x32xf32>
      %29 = vector.broadcast %9 : vector<1x32xf32> to vector<16x32xf32>
      %30 = arith.mulf %28, %29 : vector<16x32xf32>
      %31 = vector.broadcast %10 : vector<1x32xf32> to vector<16x32xf32>
      %32 = arith.addf %30, %31 : vector<16x32xf32>
      %c0_17 = arith.constant 0 : index
      %c0_18 = arith.constant 0 : index
      %33 = vector.load %arg8[%c0_17, %c0_18] : memref<16x32xf32, #tpu.memory_space<vmem>>, vector<16x32xf32>
      tpu.vector_store %arg8[%c0_17, %c0_18], %32 {strides = array<i32>} : memref<16x32xf32, #tpu.memory_space<vmem>>, vector<16x32xf32>,
      %c0_19 = arith.constant 0 : index
      %c0_20 = arith.constant 0 : index
      %34 = vector.load %arg7[%c0_19, %c0_20] : memref<16x32xf32, #tpu.memory_space<vmem>>, vector<16x32xf32>
      tpu.vector_store %arg7[%c0_19, %c0_20], %32 {strides = array<i32>} : memref<16x32xf32, #tpu.memory_space<vmem>>, vector<16x32xf32>,
    } else {
    }
    %c0 = arith.constant 0 : index
    %c0_1 = arith.constant 0 : index
    %3 = vector.load %arg8[%c0, %c0_1] : memref<16x32xf32, #tpu.memory_space<vmem>>, vector<16x32xf32>
    %4 = arith.truncf %3 : vector<16x32xf32> to vector<16x32xbf16>
    %c0_2 = arith.constant 0 : index
    %c0_3 = arith.constant 0 : index
    %5 = vector.load %arg5[%c0_2, %c0_3] : memref<32x64xbf16, #tpu.memory_space<vmem>>, vector<32x64xbf16>
    %cst = arith.constant dense<0.000000e+00> : vector<16x64xf32>
    %6 = tpu.matmul %4, %5, %cst {dimension_numbers = #tpu.dot_dimension_numbers<[1], [0], [0], [1], [0, 0, 1, 1], [], []>} : vector<16x32xbf16>, vector<32x64xbf16>, vector<16x64xf32> -> vector<16x64xf32>
    %c0_4 = arith.constant 0 : index
    %c0_5 = arith.constant 0 : index
    %7 = vector.load %arg6[%c0_4, %c0_5] : memref<16x64xf32, #tpu.memory_space<vmem>>, vector<16x64xf32>
    tpu.vector_store %arg6[%c0_4, %c0_5], %6 {strides = array<i32>} : memref<16x64xf32, #tpu.memory_space<vmem>>, vector<16x64xf32>,
    return
  }
  func.func @transform_0(%arg0: i32, %arg1: i32) -> (i32, i32) {
    %c0_i32 = arith.constant 0 : i32
    %c0_i32_0 = arith.constant 0 : i32
    return %arg0, %c0_i32 : i32, i32
  }
  func.func @transform_1(%arg0: i32, %arg1: i32) -> (i32, i32) {
    %c0_i32 = arith.constant 0 : i32
    %c0_i32_0 = arith.constant 0 : i32
    %c0_i32_1 = arith.constant 0 : i32
    return %c0_i32, %c0_i32_0 : i32, i32
  }
  func.func @transform_2(%arg0: i32, %arg1: i32) -> (i32, i32) {
    %c0_i32 = arith.constant 0 : i32
    %c0_i32_0 = arith.constant 0 : i32
    %c0_i32_1 = arith.constant 0 : i32
    return %c0_i32, %c0_i32_0 : i32, i32
  }
  func.func @transform_3(%arg0: i32, %arg1: i32) -> (i32, i32) {
    %c0_i32 = arith.constant 0 : i32
    %c0_i32_0 = arith.constant 0 : i32
    return %c0_i32, %arg1 : i32, i32
  }
  func.func @transform_4(%arg0: i32, %arg1: i32) -> (i32, i32) {
    %c0_i32 = arith.constant 0 : i32
    return %arg0, %arg1 : i32, i32
  }
  func.func @transform_5(%arg0: i32, %arg1: i32) -> (i32, i32) {
    %c0_i32 = arith.constant 0 : i32
    %c0_i32_0 = arith.constant 0 : i32
    return %arg0, %c0_i32 : i32, i32
  }
}

module attributes {stable_mosaic.version = 11 : i64} {
  func.func @rwkv_stack_kernel(%arg0: i32, %arg1: i32, %arg2: memref<1x64x32xf32, #tpu.memory_space<vmem>>, %arg3: memref<1x16x32xf32, #tpu.memory_space<vmem>>, %arg4: memref<1x32x32xbf16, #tpu.memory_space<vmem>>, %arg5: memref<1x32x32xbf16, #tpu.memory_space<vmem>>, %arg6: memref<1x32x32xbf16, #tpu.memory_space<vmem>>, %arg7: memref<1x32x32xbf16, #tpu.memory_space<vmem>>, %arg8: memref<1x32x64xbf16, #tpu.memory_space<vmem>>, %arg9: memref<1x64x32xbf16, #tpu.memory_space<vmem>>, %arg10: memref<1x32x32xbf16, #tpu.memory_space<vmem>>, %arg11: memref<1x64x32xf32, #tpu.memory_space<vmem>>, %arg12: memref<64x32xf32, #tpu.memory_space<vmem>>, %arg13: memref<64x32xf32, #tpu.memory_space<vmem>>) attributes {dimension_semantics = [#tpu.dimension_semantics<parallel>, #tpu.dimension_semantics<arbitrary>], iteration_bounds = array<i64: 1, 2>, scalar_prefetch = 0 : i64, scratch_operands = 2 : i64, tpu.core_type = #tpu.core_type<tc>, window_params = [{transform_indices = @transform_0, window_bounds = array<i64: 1, 64, 32>}, {transform_indices = @transform_1, window_bounds = array<i64: 1, 16, 32>}, {transform_indices = @transform_2, window_bounds = array<i64: 1, 32, 32>}, {transform_indices = @transform_3, window_bounds = array<i64: 1, 32, 32>}, {transform_indices = @transform_4, window_bounds = array<i64: 1, 32, 32>}, {transform_indices = @transform_5, window_bounds = array<i64: 1, 32, 32>}, {transform_indices = @transform_6, window_bounds = array<i64: 1, 32, 64>}, {transform_indices = @transform_7, window_bounds = array<i64: 1, 64, 32>}, {transform_indices = @transform_8, window_bounds = array<i64: 1, 32, 32>}, {transform_indices = @transform_9, window_bounds = array<i64: 1, 64, 32>}]} {
    %c0_i32 = arith.constant 0 : i32
    %0 = arith.cmpi eq, %arg1, %c0_i32 : i32
    %1 = arith.extui %0 : i1 to i32
    %c0_i32_0 = arith.constant 0 : i32
    %2 = arith.cmpi ne, %1, %c0_i32_0 : i32
    scf.if %2 {
      %c0_96 = arith.constant 0 : index
      %c0_97 = arith.constant 0 : index
      %c0_98 = arith.constant 0 : index
      %427 = vector.load %arg2[%c0_96, %c0_97, %c0_98] : memref<1x64x32xf32, #tpu.memory_space<vmem>>, vector<1x64x32xf32>
      %428 = vector.shape_cast %427 : vector<1x64x32xf32> to vector<64x32xf32>
      %c0_99 = arith.constant 0 : index
      %c0_100 = arith.constant 0 : index
      %c0_101 = arith.constant 0 : index
      %429 = vector.load %arg11[%c0_99, %c0_100, %c0_101] : memref<1x64x32xf32, #tpu.memory_space<vmem>>, vector<1x64x32xf32>
      %430 = vector.shape_cast %429 : vector<1x64x32xf32> to vector<64x32xf32>
      %431 = vector.shape_cast %428 : vector<64x32xf32> to vector<1x64x32xf32>
      tpu.vector_store %arg11[%c0_99, %c0_100, %c0_101], %431 {strides = array<i32>} : memref<1x64x32xf32, #tpu.memory_space<vmem>>, vector<1x64x32xf32>,
    } else {
    }
    %c0 = arith.constant 0 : index
    %c0_1 = arith.constant 0 : index
    %c0_2 = arith.constant 0 : index
    %3 = vector.load %arg3[%c0, %c0_1, %c0_2] : memref<1x16x32xf32, #tpu.memory_space<vmem>>, vector<1x16x32xf32>
    %4 = vector.shape_cast %3 : vector<1x16x32xf32> to vector<16x32xf32>
    %c0_3 = arith.constant 0 : index
    %c0_4 = arith.constant 0 : index
    %c0_5 = arith.constant 0 : index
    %5 = vector.load %arg11[%c0_3, %c0_4, %c0_5] : memref<1x64x32xf32, #tpu.memory_space<vmem>>, vector<1x64x32xf32>
    %6 = vector.shape_cast %5 : vector<1x64x32xf32> to vector<64x32xf32>
    %7 = tpu.iota {dimensions = array<i32: 0>} : vector<64x32xi32>
    %c8_i32 = arith.constant 8 : i32
    %8 = vector.broadcast %c8_i32 : i32 to vector<64x32xi32>
    %9 = arith.cmpi sge, %7, %8 : vector<64x32xi32>
    %10 = vector.extract_strided_slice %4 {offsets = [0, 0], sizes = [1, 32], strides = [1, 1]} : vector<16x32xf32> to vector<1x32xf32>
    %11 = vector.extract_strided_slice %4 {offsets = [1, 0], sizes = [1, 32], strides = [1, 1]} : vector<16x32xf32> to vector<1x32xf32>
    %cst = arith.constant dense<0.000000e+00> : vector<64xf32>
    %12 = vector.multi_reduction <add>, %6, %cst [1] : vector<64x32xf32> to vector<64xf32>
    %13 = vector.shape_cast %12 : vector<64xf32> to vector<64x1xf32>
    %cst_6 = arith.constant 3.200000e+01 : f32
    %14 = vector.broadcast %cst_6 : f32 to vector<64x1xf32>
    %15 = arith.divf %13, %14 : vector<64x1xf32>
    %16 = vector.broadcast %15 : vector<64x1xf32> to vector<64x32xf32>
    %17 = arith.subf %6, %16 : vector<64x32xf32>
    %18 = arith.mulf %17, %17 : vector<64x32xf32>
    %cst_7 = arith.constant dense<0.000000e+00> : vector<64xf32>
    %19 = vector.multi_reduction <add>, %18, %cst_7 [1] : vector<64x32xf32> to vector<64xf32>
    %20 = vector.shape_cast %19 : vector<64xf32> to vector<64x1xf32>
    %cst_8 = arith.constant 3.200000e+01 : f32
    %21 = vector.broadcast %cst_8 : f32 to vector<64x1xf32>
    %22 = arith.divf %20, %21 : vector<64x1xf32>
    %23 = vector.broadcast %15 : vector<64x1xf32> to vector<64x32xf32>
    %24 = arith.subf %6, %23 : vector<64x32xf32>
    %cst_9 = arith.constant 9.99999974E-6 : f32
    %25 = vector.broadcast %cst_9 : f32 to vector<64x1xf32>
    %26 = arith.addf %22, %25 : vector<64x1xf32>
    %27 = math.rsqrt %26 : vector<64x1xf32>
    %28 = vector.broadcast %27 : vector<64x1xf32> to vector<64x32xf32>
    %29 = arith.mulf %24, %28 : vector<64x32xf32>
    %30 = vector.broadcast %10 : vector<1x32xf32> to vector<64x32xf32>
    %31 = arith.mulf %29, %30 : vector<64x32xf32>
    %32 = vector.broadcast %11 : vector<1x32xf32> to vector<64x32xf32>
    %33 = arith.addf %31, %32 : vector<64x32xf32>
    %c8_i32_10 = arith.constant 8 : i32
    %34 = tpu.dynamic_rotate %33 by %c8_i32_10 dim 0 : vector<64x32xf32>, i32 -> vector<64x32xf32>
    %cst_11 = arith.constant 0.000000e+00 : f32
    %35 = vector.broadcast %cst_11 : f32 to vector<64x32xf32>
    %36 = arith.select %9, %34, %35 : vector<64x32xi1>, vector<64x32xf32>
    %37 = vector.extract_strided_slice %4 {offsets = [4, 0], sizes = [1, 32], strides = [1, 1]} : vector<16x32xf32> to vector<1x32xf32>
    %38 = vector.broadcast %37 : vector<1x32xf32> to vector<64x32xf32>
    %39 = arith.mulf %33, %38 : vector<64x32xf32>
    %40 = vector.extract_strided_slice %4 {offsets = [5, 0], sizes = [1, 32], strides = [1, 1]} : vector<16x32xf32> to vector<1x32xf32>
    %41 = vector.broadcast %40 : vector<1x32xf32> to vector<64x32xf32>
    %42 = arith.mulf %36, %41 : vector<64x32xf32>
    %43 = arith.addf %39, %42 : vector<64x32xf32>
    %44 = vector.extract_strided_slice %4 {offsets = [6, 0], sizes = [1, 32], strides = [1, 1]} : vector<16x32xf32> to vector<1x32xf32>
    %45 = vector.broadcast %44 : vector<1x32xf32> to vector<64x32xf32>
    %46 = arith.mulf %33, %45 : vector<64x32xf32>
    %47 = vector.extract_strided_slice %4 {offsets = [7, 0], sizes = [1, 32], strides = [1, 1]} : vector<16x32xf32> to vector<1x32xf32>
    %48 = vector.broadcast %47 : vector<1x32xf32> to vector<64x32xf32>
    %49 = arith.mulf %36, %48 : vector<64x32xf32>
    %50 = arith.addf %46, %49 : vector<64x32xf32>
    %51 = vector.extract_strided_slice %4 {offsets = [8, 0], sizes = [1, 32], strides = [1, 1]} : vector<16x32xf32> to vector<1x32xf32>
    %52 = vector.broadcast %51 : vector<1x32xf32> to vector<64x32xf32>
    %53 = arith.mulf %33, %52 : vector<64x32xf32>
    %54 = vector.extract_strided_slice %4 {offsets = [9, 0], sizes = [1, 32], strides = [1, 1]} : vector<16x32xf32> to vector<1x32xf32>
    %55 = vector.broadcast %54 : vector<1x32xf32> to vector<64x32xf32>
    %56 = arith.mulf %36, %55 : vector<64x32xf32>
    %57 = arith.addf %53, %56 : vector<64x32xf32>
    %58 = arith.truncf %43 : vector<64x32xf32> to vector<64x32xbf16>
    %c0_12 = arith.constant 0 : index
    %c0_13 = arith.constant 0 : index
    %c0_14 = arith.constant 0 : index
    %59 = vector.load %arg4[%c0_12, %c0_13, %c0_14] : memref<1x32x32xbf16, #tpu.memory_space<vmem>>, vector<1x32x32xbf16>
    %60 = vector.shape_cast %59 : vector<1x32x32xbf16> to vector<32x32xbf16>
    %cst_15 = arith.constant dense<0.000000e+00> : vector<64x32xf32>
    %61 = tpu.matmul %58, %60, %cst_15 {dimension_numbers = #tpu.dot_dimension_numbers<[1], [0], [0], [1], [0, 0, 1, 1], [], []>} : vector<64x32xbf16>, vector<32x32xbf16>, vector<64x32xf32> -> vector<64x32xf32>
    %c0_16 = arith.constant 0 : index
    %c0_17 = arith.constant 0 : index
    %62 = vector.load %arg12[%c0_16, %c0_17] : memref<64x32xf32, #tpu.memory_space<vmem>>, vector<64x32xf32>
    tpu.vector_store %arg12[%c0_16, %c0_17], %61 {strides = array<i32>} : memref<64x32xf32, #tpu.memory_space<vmem>>, vector<64x32xf32>,
    %63 = arith.truncf %50 : vector<64x32xf32> to vector<64x32xbf16>
    %c0_18 = arith.constant 0 : index
    %c0_19 = arith.constant 0 : index
    %c0_20 = arith.constant 0 : index
    %64 = vector.load %arg5[%c0_18, %c0_19, %c0_20] : memref<1x32x32xbf16, #tpu.memory_space<vmem>>, vector<1x32x32xbf16>
    %65 = vector.shape_cast %64 : vector<1x32x32xbf16> to vector<32x32xbf16>
    %cst_21 = arith.constant dense<0.000000e+00> : vector<64x32xf32>
    %66 = tpu.matmul %63, %65, %cst_21 {dimension_numbers = #tpu.dot_dimension_numbers<[1], [0], [0], [1], [0, 0, 1, 1], [], []>} : vector<64x32xbf16>, vector<32x32xbf16>, vector<64x32xf32> -> vector<64x32xf32>
    %c0_22 = arith.constant 0 : index
    %c0_23 = arith.constant 0 : index
    %67 = vector.load %arg13[%c0_22, %c0_23] : memref<64x32xf32, #tpu.memory_space<vmem>>, vector<64x32xf32>
    tpu.vector_store %arg13[%c0_22, %c0_23], %66 {strides = array<i32>} : memref<64x32xf32, #tpu.memory_space<vmem>>, vector<64x32xf32>,
    %68 = arith.truncf %57 : vector<64x32xf32> to vector<64x32xbf16>
    %c0_24 = arith.constant 0 : index
    %c0_25 = arith.constant 0 : index
    %c0_26 = arith.constant 0 : index
    %69 = vector.load %arg6[%c0_24, %c0_25, %c0_26] : memref<1x32x32xbf16, #tpu.memory_space<vmem>>, vector<1x32x32xbf16>
    %70 = vector.shape_cast %69 : vector<1x32x32xbf16> to vector<32x32xbf16>
    %cst_27 = arith.constant dense<0.000000e+00> : vector<64x32xf32>
    %71 = tpu.matmul %68, %70, %cst_27 {dimension_numbers = #tpu.dot_dimension_numbers<[1], [0], [0], [1], [0, 0, 1, 1], [], []>} : vector<64x32xbf16>, vector<32x32xbf16>, vector<64x32xf32> -> vector<64x32xf32>
    %72 = arith.negf %71 : vector<64x32xf32>
    %73 = math.exp %72 : vector<64x32xf32>
    %cst_28 = arith.constant 1.000000e+00 : f32
    %74 = vector.broadcast %cst_28 : f32 to vector<64x32xf32>
    %75 = arith.addf %74, %73 : vector<64x32xf32>
    %76 = arith.divf %74, %75 : vector<64x32xf32>
    %77 = vector.extract_strided_slice %4 {offsets = [10, 0], sizes = [1, 32], strides = [1, 1]} : vector<16x32xf32> to vector<1x32xf32>
    %78 = vector.extract_strided_slice %4 {offsets = [11, 0], sizes = [1, 32], strides = [1, 1]} : vector<16x32xf32> to vector<1x32xf32>
    %cst_29 = arith.constant 0.000000e+00 : f32
    %79 = vector.broadcast %cst_29 : f32 to vector<8x32xf32>
    %cst_30 = arith.constant 0.000000e+00 : f32
    %80 = vector.broadcast %cst_30 : f32 to vector<8x32xf32>
    %cst_31 = arith.constant -1.000000e+30 : f32
    %81 = vector.broadcast %cst_31 : f32 to vector<8x32xf32>
    %c0_i32_32 = arith.constant 0 : i32
    %c8_i32_33 = arith.constant 8 : i32
    %82 = arith.muli %c0_i32_32, %c8_i32_33 : i32
    %83 = tpu.assume_multiple %82, 8 : i32
    %84 = arith.index_cast %83 : i32 to index
    %c0_34 = arith.constant 0 : index
    %85 = vector.load %arg12[%84, %c0_34] : memref<64x32xf32, #tpu.memory_space<vmem>>, vector<8x32xf32>
    %86 = arith.index_cast %83 : i32 to index
    %c0_35 = arith.constant 0 : index
    %87 = vector.load %arg13[%86, %c0_35] : memref<64x32xf32, #tpu.memory_space<vmem>>, vector<8x32xf32>
    %88 = vector.broadcast %78 : vector<1x32xf32> to vector<8x32xf32>
    %89 = arith.addf %88, %85 : vector<8x32xf32>
    %90 = arith.maximumf %81, %89 : vector<8x32xf32>
    %91 = arith.subf %81, %90 : vector<8x32xf32>
    %92 = math.exp %91 : vector<8x32xf32>
    %93 = arith.subf %89, %90 : vector<8x32xf32>
    %94 = math.exp %93 : vector<8x32xf32>
    %95 = arith.mulf %92, %79 : vector<8x32xf32>
    %96 = arith.mulf %94, %87 : vector<8x32xf32>
    %97 = arith.addf %95, %96 : vector<8x32xf32>
    %98 = arith.mulf %92, %80 : vector<8x32xf32>
    %99 = arith.addf %98, %94 : vector<8x32xf32>
    %100 = tpu.reciprocal %99 {approx = true} : vector<8x32xf32> -> vector<8x32xf32>
    %101 = arith.mulf %97, %100 : vector<8x32xf32>
    %102 = arith.index_cast %83 : i32 to index
    %c0_36 = arith.constant 0 : index
    %103 = vector.load %arg12[%102, %c0_36] : memref<64x32xf32, #tpu.memory_space<vmem>>, vector<8x32xf32>
    tpu.vector_store %arg12[%102, %c0_36], %101 {strides = array<i32>} : memref<64x32xf32, #tpu.memory_space<vmem>>, vector<8x32xf32>,
    %104 = vector.broadcast %77 : vector<1x32xf32> to vector<8x32xf32>
    %105 = arith.addf %81, %104 : vector<8x32xf32>
    %106 = arith.maximumf %105, %85 : vector<8x32xf32>
    %107 = arith.subf %105, %106 : vector<8x32xf32>
    %108 = math.exp %107 : vector<8x32xf32>
    %109 = arith.subf %85, %106 : vector<8x32xf32>
    %110 = math.exp %109 : vector<8x32xf32>
    %111 = arith.mulf %108, %79 : vector<8x32xf32>
    %112 = arith.mulf %110, %87 : vector<8x32xf32>
    %113 = arith.addf %111, %112 : vector<8x32xf32>
    %114 = arith.mulf %108, %80 : vector<8x32xf32>
    %115 = arith.addf %114, %110 : vector<8x32xf32>
    %c1_i32 = arith.constant 1 : i32
    %c8_i32_37 = arith.constant 8 : i32
    %116 = arith.muli %c1_i32, %c8_i32_37 : i32
    %117 = tpu.assume_multiple %116, 8 : i32
    %118 = arith.index_cast %117 : i32 to index
    %c0_38 = arith.constant 0 : index
    %119 = vector.load %arg12[%118, %c0_38] : memref<64x32xf32, #tpu.memory_space<vmem>>, vector<8x32xf32>
    %120 = arith.index_cast %117 : i32 to index
    %c0_39 = arith.constant 0 : index
    %121 = vector.load %arg13[%120, %c0_39] : memref<64x32xf32, #tpu.memory_space<vmem>>, vector<8x32xf32>
    %122 = vector.broadcast %78 : vector<1x32xf32> to vector<8x32xf32>
    %123 = arith.addf %122, %119 : vector<8x32xf32>
    %124 = arith.maximumf %106, %123 : vector<8x32xf32>
    %125 = arith.subf %106, %124 : vector<8x32xf32>
    %126 = math.exp %125 : vector<8x32xf32>
    %127 = arith.subf %123, %124 : vector<8x32xf32>
    %128 = math.exp %127 : vector<8x32xf32>
    %129 = arith.mulf %126, %113 : vector<8x32xf32>
    %130 = arith.mulf %128, %121 : vector<8x32xf32>
    %131 = arith.addf %129, %130 : vector<8x32xf32>
    %132 = arith.mulf %126, %115 : vector<8x32xf32>
    %133 = arith.addf %132, %128 : vector<8x32xf32>
    %134 = tpu.reciprocal %133 {approx = true} : vector<8x32xf32> -> vector<8x32xf32>
    %135 = arith.mulf %131, %134 : vector<8x32xf32>
    %136 = arith.index_cast %117 : i32 to index
    %c0_40 = arith.constant 0 : index
    %137 = vector.load %arg12[%136, %c0_40] : memref<64x32xf32, #tpu.memory_space<vmem>>, vector<8x32xf32>
    tpu.vector_store %arg12[%136, %c0_40], %135 {strides = array<i32>} : memref<64x32xf32, #tpu.memory_space<vmem>>, vector<8x32xf32>,
    %138 = vector.broadcast %77 : vector<1x32xf32> to vector<8x32xf32>
    %139 = arith.addf %106, %138 : vector<8x32xf32>
    %140 = arith.maximumf %139, %119 : vector<8x32xf32>
    %141 = arith.subf %139, %140 : vector<8x32xf32>
    %142 = math.exp %141 : vector<8x32xf32>
    %143 = arith.subf %119, %140 : vector<8x32xf32>
    %144 = math.exp %143 : vector<8x32xf32>
    %145 = arith.mulf %142, %113 : vector<8x32xf32>
    %146 = arith.mulf %144, %121 : vector<8x32xf32>
    %147 = arith.addf %145, %146 : vector<8x32xf32>
    %148 = arith.mulf %142, %115 : vector<8x32xf32>
    %149 = arith.addf %148, %144 : vector<8x32xf32>
    %c2_i32 = arith.constant 2 : i32
    %c8_i32_41 = arith.constant 8 : i32
    %150 = arith.muli %c2_i32, %c8_i32_41 : i32
    %151 = tpu.assume_multiple %150, 8 : i32
    %152 = arith.index_cast %151 : i32 to index
    %c0_42 = arith.constant 0 : index
    %153 = vector.load %arg12[%152, %c0_42] : memref<64x32xf32, #tpu.memory_space<vmem>>, vector<8x32xf32>
    %154 = arith.index_cast %151 : i32 to index
    %c0_43 = arith.constant 0 : index
    %155 = vector.load %arg13[%154, %c0_43] : memref<64x32xf32, #tpu.memory_space<vmem>>, vector<8x32xf32>
    %156 = vector.broadcast %78 : vector<1x32xf32> to vector<8x32xf32>
    %157 = arith.addf %156, %153 : vector<8x32xf32>
    %158 = arith.maximumf %140, %157 : vector<8x32xf32>
    %159 = arith.subf %140, %158 : vector<8x32xf32>
    %160 = math.exp %159 : vector<8x32xf32>
    %161 = arith.subf %157, %158 : vector<8x32xf32>
    %162 = math.exp %161 : vector<8x32xf32>
    %163 = arith.mulf %160, %147 : vector<8x32xf32>
    %164 = arith.mulf %162, %155 : vector<8x32xf32>
    %165 = arith.addf %163, %164 : vector<8x32xf32>
    %166 = arith.mulf %160, %149 : vector<8x32xf32>
    %167 = arith.addf %166, %162 : vector<8x32xf32>
    %168 = tpu.reciprocal %167 {approx = true} : vector<8x32xf32> -> vector<8x32xf32>
    %169 = arith.mulf %165, %168 : vector<8x32xf32>
    %170 = arith.index_cast %151 : i32 to index
    %c0_44 = arith.constant 0 : index
    %171 = vector.load %arg12[%170, %c0_44] : memref<64x32xf32, #tpu.memory_space<vmem>>, vector<8x32xf32>
    tpu.vector_store %arg12[%170, %c0_44], %169 {strides = array<i32>} : memref<64x32xf32, #tpu.memory_space<vmem>>, vector<8x32xf32>,
    %172 = vector.broadcast %77 : vector<1x32xf32> to vector<8x32xf32>
    %173 = arith.addf %140, %172 : vector<8x32xf32>
    %174 = arith.maximumf %173, %153 : vector<8x32xf32>
    %175 = arith.subf %173, %174 : vector<8x32xf32>
    %176 = math.exp %175 : vector<8x32xf32>
    %177 = arith.subf %153, %174 : vector<8x32xf32>
    %178 = math.exp %177 : vector<8x32xf32>
    %179 = arith.mulf %176, %147 : vector<8x32xf32>
    %180 = arith.mulf %178, %155 : vector<8x32xf32>
    %181 = arith.addf %179, %180 : vector<8x32xf32>
    %182 = arith.mulf %176, %149 : vector<8x32xf32>
    %183 = arith.addf %182, %178 : vector<8x32xf32>
    %c3_i32 = arith.constant 3 : i32
    %c8_i32_45 = arith.constant 8 : i32
    %184 = arith.muli %c3_i32, %c8_i32_45 : i32
    %185 = tpu.assume_multiple %184, 8 : i32
    %186 = arith.index_cast %185 : i32 to index
    %c0_46 = arith.constant 0 : index
    %187 = vector.load %arg12[%186, %c0_46] : memref<64x32xf32, #tpu.memory_space<vmem>>, vector<8x32xf32>
    %188 = arith.index_cast %185 : i32 to index
    %c0_47 = arith.constant 0 : index
    %189 = vector.load %arg13[%188, %c0_47] : memref<64x32xf32, #tpu.memory_space<vmem>>, vector<8x32xf32>
    %190 = vector.broadcast %78 : vector<1x32xf32> to vector<8x32xf32>
    %191 = arith.addf %190, %187 : vector<8x32xf32>
    %192 = arith.maximumf %174, %191 : vector<8x32xf32>
    %193 = arith.subf %174, %192 : vector<8x32xf32>
    %194 = math.exp %193 : vector<8x32xf32>
    %195 = arith.subf %191, %192 : vector<8x32xf32>
    %196 = math.exp %195 : vector<8x32xf32>
    %197 = arith.mulf %194, %181 : vector<8x32xf32>
    %198 = arith.mulf %196, %189 : vector<8x32xf32>
    %199 = arith.addf %197, %198 : vector<8x32xf32>
    %200 = arith.mulf %194, %183 : vector<8x32xf32>
    %201 = arith.addf %200, %196 : vector<8x32xf32>
    %202 = tpu.reciprocal %201 {approx = true} : vector<8x32xf32> -> vector<8x32xf32>
    %203 = arith.mulf %199, %202 : vector<8x32xf32>
    %204 = arith.index_cast %185 : i32 to index
    %c0_48 = arith.constant 0 : index
    %205 = vector.load %arg12[%204, %c0_48] : memref<64x32xf32, #tpu.memory_space<vmem>>, vector<8x32xf32>
    tpu.vector_store %arg12[%204, %c0_48], %203 {strides = array<i32>} : memref<64x32xf32, #tpu.memory_space<vmem>>, vector<8x32xf32>,
    %206 = vector.broadcast %77 : vector<1x32xf32> to vector<8x32xf32>
    %207 = arith.addf %174, %206 : vector<8x32xf32>
    %208 = arith.maximumf %207, %187 : vector<8x32xf32>
    %209 = arith.subf %207, %208 : vector<8x32xf32>
    %210 = math.exp %209 : vector<8x32xf32>
    %211 = arith.subf %187, %208 : vector<8x32xf32>
    %212 = math.exp %211 : vector<8x32xf32>
    %213 = arith.mulf %210, %181 : vector<8x32xf32>
    %214 = arith.mulf %212, %189 : vector<8x32xf32>
    %215 = arith.addf %213, %214 : vector<8x32xf32>
    %216 = arith.mulf %210, %183 : vector<8x32xf32>
    %217 = arith.addf %216, %212 : vector<8x32xf32>
    %c4_i32 = arith.constant 4 : i32
    %c8_i32_49 = arith.constant 8 : i32
    %218 = arith.muli %c4_i32, %c8_i32_49 : i32
    %219 = tpu.assume_multiple %218, 8 : i32
    %220 = arith.index_cast %219 : i32 to index
    %c0_50 = arith.constant 0 : index
    %221 = vector.load %arg12[%220, %c0_50] : memref<64x32xf32, #tpu.memory_space<vmem>>, vector<8x32xf32>
    %222 = arith.index_cast %219 : i32 to index
    %c0_51 = arith.constant 0 : index
    %223 = vector.load %arg13[%222, %c0_51] : memref<64x32xf32, #tpu.memory_space<vmem>>, vector<8x32xf32>
    %224 = vector.broadcast %78 : vector<1x32xf32> to vector<8x32xf32>
    %225 = arith.addf %224, %221 : vector<8x32xf32>
    %226 = arith.maximumf %208, %225 : vector<8x32xf32>
    %227 = arith.subf %208, %226 : vector<8x32xf32>
    %228 = math.exp %227 : vector<8x32xf32>
    %229 = arith.subf %225, %226 : vector<8x32xf32>
    %230 = math.exp %229 : vector<8x32xf32>
    %231 = arith.mulf %228, %215 : vector<8x32xf32>
    %232 = arith.mulf %230, %223 : vector<8x32xf32>
    %233 = arith.addf %231, %232 : vector<8x32xf32>
    %234 = arith.mulf %228, %217 : vector<8x32xf32>
    %235 = arith.addf %234, %230 : vector<8x32xf32>
    %236 = tpu.reciprocal %235 {approx = true} : vector<8x32xf32> -> vector<8x32xf32>
    %237 = arith.mulf %233, %236 : vector<8x32xf32>
    %238 = arith.index_cast %219 : i32 to index
    %c0_52 = arith.constant 0 : index
    %239 = vector.load %arg12[%238, %c0_52] : memref<64x32xf32, #tpu.memory_space<vmem>>, vector<8x32xf32>
    tpu.vector_store %arg12[%238, %c0_52], %237 {strides = array<i32>} : memref<64x32xf32, #tpu.memory_space<vmem>>, vector<8x32xf32>,
    %240 = vector.broadcast %77 : vector<1x32xf32> to vector<8x32xf32>
    %241 = arith.addf %208, %240 : vector<8x32xf32>
    %242 = arith.maximumf %241, %221 : vector<8x32xf32>
    %243 = arith.subf %241, %242 : vector<8x32xf32>
    %244 = math.exp %243 : vector<8x32xf32>
    %245 = arith.subf %221, %242 : vector<8x32xf32>
    %246 = math.exp %245 : vector<8x32xf32>
    %247 = arith.mulf %244, %215 : vector<8x32xf32>
    %248 = arith.mulf %246, %223 : vector<8x32xf32>
    %249 = arith.addf %247, %248 : vector<8x32xf32>
    %250 = arith.mulf %244, %217 : vector<8x32xf32>
    %251 = arith.addf %250, %246 : vector<8x32xf32>
    %c5_i32 = arith.constant 5 : i32
    %c8_i32_53 = arith.constant 8 : i32
    %252 = arith.muli %c5_i32, %c8_i32_53 : i32
    %253 = tpu.assume_multiple %252, 8 : i32
    %254 = arith.index_cast %253 : i32 to index
    %c0_54 = arith.constant 0 : index
    %255 = vector.load %arg12[%254, %c0_54] : memref<64x32xf32, #tpu.memory_space<vmem>>, vector<8x32xf32>
    %256 = arith.index_cast %253 : i32 to index
    %c0_55 = arith.constant 0 : index
    %257 = vector.load %arg13[%256, %c0_55] : memref<64x32xf32, #tpu.memory_space<vmem>>, vector<8x32xf32>
    %258 = vector.broadcast %78 : vector<1x32xf32> to vector<8x32xf32>
    %259 = arith.addf %258, %255 : vector<8x32xf32>
    %260 = arith.maximumf %242, %259 : vector<8x32xf32>
    %261 = arith.subf %242, %260 : vector<8x32xf32>
    %262 = math.exp %261 : vector<8x32xf32>
    %263 = arith.subf %259, %260 : vector<8x32xf32>
    %264 = math.exp %263 : vector<8x32xf32>
    %265 = arith.mulf %262, %249 : vector<8x32xf32>
    %266 = arith.mulf %264, %257 : vector<8x32xf32>
    %267 = arith.addf %265, %266 : vector<8x32xf32>
    %268 = arith.mulf %262, %251 : vector<8x32xf32>
    %269 = arith.addf %268, %264 : vector<8x32xf32>
    %270 = tpu.reciprocal %269 {approx = true} : vector<8x32xf32> -> vector<8x32xf32>
    %271 = arith.mulf %267, %270 : vector<8x32xf32>
    %272 = arith.index_cast %253 : i32 to index
    %c0_56 = arith.constant 0 : index
    %273 = vector.load %arg12[%272, %c0_56] : memref<64x32xf32, #tpu.memory_space<vmem>>, vector<8x32xf32>
    tpu.vector_store %arg12[%272, %c0_56], %271 {strides = array<i32>} : memref<64x32xf32, #tpu.memory_space<vmem>>, vector<8x32xf32>,
    %274 = vector.broadcast %77 : vector<1x32xf32> to vector<8x32xf32>
    %275 = arith.addf %242, %274 : vector<8x32xf32>
    %276 = arith.maximumf %275, %255 : vector<8x32xf32>
    %277 = arith.subf %275, %276 : vector<8x32xf32>
    %278 = math.exp %277 : vector<8x32xf32>
    %279 = arith.subf %255, %276 : vector<8x32xf32>
    %280 = math.exp %279 : vector<8x32xf32>
    %281 = arith.mulf %278, %249 : vector<8x32xf32>
    %282 = arith.mulf %280, %257 : vector<8x32xf32>
    %283 = arith.addf %281, %282 : vector<8x32xf32>
    %284 = arith.mulf %278, %251 : vector<8x32xf32>
    %285 = arith.addf %284, %280 : vector<8x32xf32>
    %c6_i32 = arith.constant 6 : i32
    %c8_i32_57 = arith.constant 8 : i32
    %286 = arith.muli %c6_i32, %c8_i32_57 : i32
    %287 = tpu.assume_multiple %286, 8 : i32
    %288 = arith.index_cast %287 : i32 to index
    %c0_58 = arith.constant 0 : index
    %289 = vector.load %arg12[%288, %c0_58] : memref<64x32xf32, #tpu.memory_space<vmem>>, vector<8x32xf32>
    %290 = arith.index_cast %287 : i32 to index
    %c0_59 = arith.constant 0 : index
    %291 = vector.load %arg13[%290, %c0_59] : memref<64x32xf32, #tpu.memory_space<vmem>>, vector<8x32xf32>
    %292 = vector.broadcast %78 : vector<1x32xf32> to vector<8x32xf32>
    %293 = arith.addf %292, %289 : vector<8x32xf32>
    %294 = arith.maximumf %276, %293 : vector<8x32xf32>
    %295 = arith.subf %276, %294 : vector<8x32xf32>
    %296 = math.exp %295 : vector<8x32xf32>
    %297 = arith.subf %293, %294 : vector<8x32xf32>
    %298 = math.exp %297 : vector<8x32xf32>
    %299 = arith.mulf %296, %283 : vector<8x32xf32>
    %300 = arith.mulf %298, %291 : vector<8x32xf32>
    %301 = arith.addf %299, %300 : vector<8x32xf32>
    %302 = arith.mulf %296, %285 : vector<8x32xf32>
    %303 = arith.addf %302, %298 : vector<8x32xf32>
    %304 = tpu.reciprocal %303 {approx = true} : vector<8x32xf32> -> vector<8x32xf32>
    %305 = arith.mulf %301, %304 : vector<8x32xf32>
    %306 = arith.index_cast %287 : i32 to index
    %c0_60 = arith.constant 0 : index
    %307 = vector.load %arg12[%306, %c0_60] : memref<64x32xf32, #tpu.memory_space<vmem>>, vector<8x32xf32>
    tpu.vector_store %arg12[%306, %c0_60], %305 {strides = array<i32>} : memref<64x32xf32, #tpu.memory_space<vmem>>, vector<8x32xf32>,
    %308 = vector.broadcast %77 : vector<1x32xf32> to vector<8x32xf32>
    %309 = arith.addf %276, %308 : vector<8x32xf32>
    %310 = arith.maximumf %309, %289 : vector<8x32xf32>
    %311 = arith.subf %309, %310 : vector<8x32xf32>
    %312 = math.exp %311 : vector<8x32xf32>
    %313 = arith.subf %289, %310 : vector<8x32xf32>
    %314 = math.exp %313 : vector<8x32xf32>
    %315 = arith.mulf %312, %283 : vector<8x32xf32>
    %316 = arith.mulf %314, %291 : vector<8x32xf32>
    %317 = arith.addf %315, %316 : vector<8x32xf32>
    %318 = arith.mulf %312, %285 : vector<8x32xf32>
    %319 = arith.addf %318, %314 : vector<8x32xf32>
    %c7_i32 = arith.constant 7 : i32
    %c8_i32_61 = arith.constant 8 : i32
    %320 = arith.muli %c7_i32, %c8_i32_61 : i32
    %321 = tpu.assume_multiple %320, 8 : i32
    %322 = arith.index_cast %321 : i32 to index
    %c0_62 = arith.constant 0 : index
    %323 = vector.load %arg12[%322, %c0_62] : memref<64x32xf32, #tpu.memory_space<vmem>>, vector<8x32xf32>
    %324 = arith.index_cast %321 : i32 to index
    %c0_63 = arith.constant 0 : index
    %325 = vector.load %arg13[%324, %c0_63] : memref<64x32xf32, #tpu.memory_space<vmem>>, vector<8x32xf32>
    %326 = vector.broadcast %78 : vector<1x32xf32> to vector<8x32xf32>
    %327 = arith.addf %326, %323 : vector<8x32xf32>
    %328 = arith.maximumf %310, %327 : vector<8x32xf32>
    %329 = arith.subf %310, %328 : vector<8x32xf32>
    %330 = math.exp %329 : vector<8x32xf32>
    %331 = arith.subf %327, %328 : vector<8x32xf32>
    %332 = math.exp %331 : vector<8x32xf32>
    %333 = arith.mulf %330, %317 : vector<8x32xf32>
    %334 = arith.mulf %332, %325 : vector<8x32xf32>
    %335 = arith.addf %333, %334 : vector<8x32xf32>
    %336 = arith.mulf %330, %319 : vector<8x32xf32>
    %337 = arith.addf %336, %332 : vector<8x32xf32>
    %338 = tpu.reciprocal %337 {approx = true} : vector<8x32xf32> -> vector<8x32xf32>
    %339 = arith.mulf %335, %338 : vector<8x32xf32>
    %340 = arith.index_cast %321 : i32 to index
    %c0_64 = arith.constant 0 : index
    %341 = vector.load %arg12[%340, %c0_64] : memref<64x32xf32, #tpu.memory_space<vmem>>, vector<8x32xf32>
    tpu.vector_store %arg12[%340, %c0_64], %339 {strides = array<i32>} : memref<64x32xf32, #tpu.memory_space<vmem>>, vector<8x32xf32>,
    %342 = vector.broadcast %77 : vector<1x32xf32> to vector<8x32xf32>
    %343 = arith.addf %310, %342 : vector<8x32xf32>
    %344 = arith.maximumf %343, %323 : vector<8x32xf32>
    %345 = arith.subf %343, %344 : vector<8x32xf32>
    %346 = math.exp %345 : vector<8x32xf32>
    %347 = arith.subf %323, %344 : vector<8x32xf32>
    %348 = math.exp %347 : vector<8x32xf32>
    %349 = arith.mulf %346, %317 : vector<8x32xf32>
    %350 = arith.mulf %348, %325 : vector<8x32xf32>
    %351 = arith.addf %349, %350 : vector<8x32xf32>
    %352 = arith.mulf %346, %319 : vector<8x32xf32>
    %353 = arith.addf %352, %348 : vector<8x32xf32>
    %c8_i32_65 = arith.constant 8 : i32
    %c0_66 = arith.constant 0 : index
    %c0_67 = arith.constant 0 : index
    %354 = vector.load %arg12[%c0_66, %c0_67] : memref<64x32xf32, #tpu.memory_space<vmem>>, vector<64x32xf32>
    %355 = arith.mulf %76, %354 : vector<64x32xf32>
    %356 = arith.truncf %355 : vector<64x32xf32> to vector<64x32xbf16>
    %c0_68 = arith.constant 0 : index
    %c0_69 = arith.constant 0 : index
    %c0_70 = arith.constant 0 : index
    %357 = vector.load %arg7[%c0_68, %c0_69, %c0_70] : memref<1x32x32xbf16, #tpu.memory_space<vmem>>, vector<1x32x32xbf16>
    %358 = vector.shape_cast %357 : vector<1x32x32xbf16> to vector<32x32xbf16>
    %cst_71 = arith.constant dense<0.000000e+00> : vector<64x32xf32>
    %359 = tpu.matmul %356, %358, %cst_71 {dimension_numbers = #tpu.dot_dimension_numbers<[1], [0], [0], [1], [0, 0, 1, 1], [], []>} : vector<64x32xbf16>, vector<32x32xbf16>, vector<64x32xf32> -> vector<64x32xf32>
    %360 = arith.addf %6, %359 : vector<64x32xf32>
    %361 = vector.extract_strided_slice %4 {offsets = [2, 0], sizes = [1, 32], strides = [1, 1]} : vector<16x32xf32> to vector<1x32xf32>
    %362 = vector.extract_strided_slice %4 {offsets = [3, 0], sizes = [1, 32], strides = [1, 1]} : vector<16x32xf32> to vector<1x32xf32>
    %cst_72 = arith.constant dense<0.000000e+00> : vector<64xf32>
    %363 = vector.multi_reduction <add>, %360, %cst_72 [1] : vector<64x32xf32> to vector<64xf32>
    %364 = vector.shape_cast %363 : vector<64xf32> to vector<64x1xf32>
    %cst_73 = arith.constant 3.200000e+01 : f32
    %365 = vector.broadcast %cst_73 : f32 to vector<64x1xf32>
    %366 = arith.divf %364, %365 : vector<64x1xf32>
    %367 = vector.broadcast %366 : vector<64x1xf32> to vector<64x32xf32>
    %368 = arith.subf %360, %367 : vector<64x32xf32>
    %369 = arith.mulf %368, %368 : vector<64x32xf32>
    %cst_74 = arith.constant dense<0.000000e+00> : vector<64xf32>
    %370 = vector.multi_reduction <add>, %369, %cst_74 [1] : vector<64x32xf32> to vector<64xf32>
    %371 = vector.shape_cast %370 : vector<64xf32> to vector<64x1xf32>
    %cst_75 = arith.constant 3.200000e+01 : f32
    %372 = vector.broadcast %cst_75 : f32 to vector<64x1xf32>
    %373 = arith.divf %371, %372 : vector<64x1xf32>
    %374 = vector.broadcast %366 : vector<64x1xf32> to vector<64x32xf32>
    %375 = arith.subf %360, %374 : vector<64x32xf32>
    %cst_76 = arith.constant 9.99999974E-6 : f32
    %376 = vector.broadcast %cst_76 : f32 to vector<64x1xf32>
    %377 = arith.addf %373, %376 : vector<64x1xf32>
    %378 = math.rsqrt %377 : vector<64x1xf32>
    %379 = vector.broadcast %378 : vector<64x1xf32> to vector<64x32xf32>
    %380 = arith.mulf %375, %379 : vector<64x32xf32>
    %381 = vector.broadcast %361 : vector<1x32xf32> to vector<64x32xf32>
    %382 = arith.mulf %380, %381 : vector<64x32xf32>
    %383 = vector.broadcast %362 : vector<1x32xf32> to vector<64x32xf32>
    %384 = arith.addf %382, %383 : vector<64x32xf32>
    %c8_i32_77 = arith.constant 8 : i32
    %385 = tpu.dynamic_rotate %384 by %c8_i32_77 dim 0 : vector<64x32xf32>, i32 -> vector<64x32xf32>
    %cst_78 = arith.constant 0.000000e+00 : f32
    %386 = vector.broadcast %cst_78 : f32 to vector<64x32xf32>
    %387 = arith.select %9, %385, %386 : vector<64x32xi1>, vector<64x32xf32>
    %388 = vector.extract_strided_slice %4 {offsets = [12, 0], sizes = [1, 32], strides = [1, 1]} : vector<16x32xf32> to vector<1x32xf32>
    %389 = vector.broadcast %388 : vector<1x32xf32> to vector<64x32xf32>
    %390 = arith.mulf %384, %389 : vector<64x32xf32>
    %391 = vector.extract_strided_slice %4 {offsets = [13, 0], sizes = [1, 32], strides = [1, 1]} : vector<16x32xf32> to vector<1x32xf32>
    %392 = vector.broadcast %391 : vector<1x32xf32> to vector<64x32xf32>
    %393 = arith.mulf %387, %392 : vector<64x32xf32>
    %394 = arith.addf %390, %393 : vector<64x32xf32>
    %395 = vector.extract_strided_slice %4 {offsets = [14, 0], sizes = [1, 32], strides = [1, 1]} : vector<16x32xf32> to vector<1x32xf32>
    %396 = vector.broadcast %395 : vector<1x32xf32> to vector<64x32xf32>
    %397 = arith.mulf %384, %396 : vector<64x32xf32>
    %398 = vector.extract_strided_slice %4 {offsets = [15, 0], sizes = [1, 32], strides = [1, 1]} : vector<16x32xf32> to vector<1x32xf32>
    %399 = vector.broadcast %398 : vector<1x32xf32> to vector<64x32xf32>
    %400 = arith.mulf %387, %399 : vector<64x32xf32>
    %401 = arith.addf %397, %400 : vector<64x32xf32>
    %402 = arith.truncf %394 : vector<64x32xf32> to vector<64x32xbf16>
    %c0_79 = arith.constant 0 : index
    %c0_80 = arith.constant 0 : index
    %c0_81 = arith.constant 0 : index
    %403 = vector.load %arg8[%c0_79, %c0_80, %c0_81] : memref<1x32x64xbf16, #tpu.memory_space<vmem>>, vector<1x32x64xbf16>
    %404 = vector.shape_cast %403 : vector<1x32x64xbf16> to vector<32x64xbf16>
    %cst_82 = arith.constant dense<0.000000e+00> : vector<64x64xf32>
    %405 = tpu.matmul %402, %404, %cst_82 {dimension_numbers = #tpu.dot_dimension_numbers<[1], [0], [0], [1], [0, 0, 1, 1], [], []>} : vector<64x32xbf16>, vector<32x64xbf16>, vector<64x64xf32> -> vector<64x64xf32>
    %cst_83 = arith.constant 0.000000e+00 : f32
    %406 = vector.broadcast %cst_83 : f32 to vector<64x64xf32>
    %407 = arith.maximumf %405, %406 : vector<64x64xf32>
    %408 = arith.mulf %407, %407 : vector<64x64xf32>
    %409 = arith.truncf %401 : vector<64x32xf32> to vector<64x32xbf16>
    %c0_84 = arith.constant 0 : index
    %c0_85 = arith.constant 0 : index
    %c0_86 = arith.constant 0 : index
    %410 = vector.load %arg10[%c0_84, %c0_85, %c0_86] : memref<1x32x32xbf16, #tpu.memory_space<vmem>>, vector<1x32x32xbf16>
    %411 = vector.shape_cast %410 : vector<1x32x32xbf16> to vector<32x32xbf16>
    %cst_87 = arith.constant dense<0.000000e+00> : vector<64x32xf32>
    %412 = tpu.matmul %409, %411, %cst_87 {dimension_numbers = #tpu.dot_dimension_numbers<[1], [0], [0], [1], [0, 0, 1, 1], [], []>} : vector<64x32xbf16>, vector<32x32xbf16>, vector<64x32xf32> -> vector<64x32xf32>
    %413 = arith.negf %412 : vector<64x32xf32>
    %414 = math.exp %413 : vector<64x32xf32>
    %cst_88 = arith.constant 1.000000e+00 : f32
    %415 = vector.broadcast %cst_88 : f32 to vector<64x32xf32>
    %416 = arith.addf %415, %414 : vector<64x32xf32>
    %417 = arith.divf %415, %416 : vector<64x32xf32>
    %418 = arith.truncf %408 : vector<64x64xf32> to vector<64x64xbf16>
    %c0_89 = arith.constant 0 : index
    %c0_90 = arith.constant 0 : index
    %c0_91 = arith.constant 0 : index
    %419 = vector.load %arg9[%c0_89, %c0_90, %c0_91] : memref<1x64x32xbf16, #tpu.memory_space<vmem>>, vector<1x64x32xbf16>
    %420 = vector.shape_cast %419 : vector<1x64x32xbf16> to vector<64x32xbf16>
    %cst_92 = arith.constant dense<0.000000e+00> : vector<64x32xf32>
    %421 = tpu.matmul %418, %420, %cst_92 {dimension_numbers = #tpu.dot_dimension_numbers<[1], [0], [0], [1], [0, 0, 1, 1], [], []>} : vector<64x64xbf16>, vector<64x32xbf16>, vector<64x32xf32> -> vector<64x32xf32>
    %422 = arith.mulf %417, %421 : vector<64x32xf32>
    %423 = arith.addf %360, %422 : vector<64x32xf32>
    %c0_93 = arith.constant 0 : index
    %c0_94 = arith.constant 0 : index
    %c0_95 = arith.constant 0 : index
    %424 = vector.load %arg11[%c0_93, %c0_94, %c0_95] : memref<1x64x32xf32, #tpu.memory_space<vmem>>, vector<1x64x32xf32>
    %425 = vector.shape_cast %424 : vector<1x64x32xf32> to vector<64x32xf32>
    %426 = vector.shape_cast %423 : vector<64x32xf32> to vector<1x64x32xf32>
    tpu.vector_store %arg11[%c0_93, %c0_94, %c0_95], %426 {strides = array<i32>} : memref<1x64x32xf32, #tpu.memory_space<vmem>>, vector<1x64x32xf32>,
    return
  }
  func.func @transform_0(%arg0: i32, %arg1: i32) -> (i32, i32, i32) {
    %c0_i32 = arith.constant 0 : i32
    %c0_i32_0 = arith.constant 0 : i32
    %c0_i32_1 = arith.constant 0 : i32
    return %arg0, %c0_i32, %c0_i32_0 : i32, i32, i32
  }
  func.func @transform_1(%arg0: i32, %arg1: i32) -> (i32, i32, i32) {
    %c0_i32 = arith.constant 0 : i32
    %c0_i32_0 = arith.constant 0 : i32
    %c0_i32_1 = arith.constant 0 : i32
    return %arg1, %c0_i32, %c0_i32_0 : i32, i32, i32
  }
  func.func @transform_2(%arg0: i32, %arg1: i32) -> (i32, i32, i32) {
    %c0_i32 = arith.constant 0 : i32
    %c0_i32_0 = arith.constant 0 : i32
    %c0_i32_1 = arith.constant 0 : i32
    return %arg1, %c0_i32, %c0_i32_0 : i32, i32, i32
  }
  func.func @transform_3(%arg0: i32, %arg1: i32) -> (i32, i32, i32) {
    %c0_i32 = arith.constant 0 : i32
    %c0_i32_0 = arith.constant 0 : i32
    %c0_i32_1 = arith.constant 0 : i32
    return %arg1, %c0_i32, %c0_i32_0 : i32, i32, i32
  }
  func.func @transform_4(%arg0: i32, %arg1: i32) -> (i32, i32, i32) {
    %c0_i32 = arith.constant 0 : i32
    %c0_i32_0 = arith.constant 0 : i32
    %c0_i32_1 = arith.constant 0 : i32
    return %arg1, %c0_i32, %c0_i32_0 : i32, i32, i32
  }
  func.func @transform_5(%arg0: i32, %arg1: i32) -> (i32, i32, i32) {
    %c0_i32 = arith.constant 0 : i32
    %c0_i32_0 = arith.constant 0 : i32
    %c0_i32_1 = arith.constant 0 : i32
    return %arg1, %c0_i32, %c0_i32_0 : i32, i32, i32
  }
  func.func @transform_6(%arg0: i32, %arg1: i32) -> (i32, i32, i32) {
    %c0_i32 = arith.constant 0 : i32
    %c0_i32_0 = arith.constant 0 : i32
    %c0_i32_1 = arith.constant 0 : i32
    return %arg1, %c0_i32, %c0_i32_0 : i32, i32, i32
  }
  func.func @transform_7(%arg0: i32, %arg1: i32) -> (i32, i32, i32) {
    %c0_i32 = arith.constant 0 : i32
    %c0_i32_0 = arith.constant 0 : i32
    %c0_i32_1 = arith.constant 0 : i32
    return %arg1, %c0_i32, %c0_i32_0 : i32, i32, i32
  }
  func.func @transform_8(%arg0: i32, %arg1: i32) -> (i32, i32, i32) {
    %c0_i32 = arith.constant 0 : i32
    %c0_i32_0 = arith.constant 0 : i32
    %c0_i32_1 = arith.constant 0 : i32
    return %arg1, %c0_i32, %c0_i32_0 : i32, i32, i32
  }
  func.func @transform_9(%arg0: i32, %arg1: i32) -> (i32, i32, i32) {
    %c0_i32 = arith.constant 0 : i32
    %c0_i32_0 = arith.constant 0 : i32
    %c0_i32_1 = arith.constant 0 : i32
    return %arg0, %c0_i32, %c0_i32_0 : i32, i32, i32
  }
}

</mosaic_0001>

<bundles_post_ra>
// kernel: rwkv_forward.3
= control target key start
LH: loop header
LB: loop body
LE: loop exit
PB: predicated region body
PF: predicated region fallthrough
CT: control target
= control target key end

     0   :  { %11 = vsyncpa [#allocation4], 0  ;;  %vm30_vm0 = vcmask 261120   ;;  %s340_s0 = inlined_call_operand.vmem [shape: f32[16,32], index: 0, kind: input, shape index: {}]   ;;  %s341_s1 = inlined_call_operand.vmem [shape: f32[1,32], index: 1, kind: input, shape index: {}]   ;;  %s342_s2 = inlined_call_operand.vmem [shape: f32[1,32], index: 2, kind: input, shape index: {}]   ;;  %s343_s3 = inlined_call_operand.vmem [shape: bf16[32,64], index: 3, kind: input, shape index: {}]   ;;  %s344_s4 = inlined_call_operand.hbm [shape: f32[16,64], index: 4, kind: output, shape index: {0}]   ;;  %s345_s5 = inlined_call_operand.hbm [shape: f32[16,32], index: 5, kind: output, shape index: {1}]  }
   0x1   :  { %v26_v0 = vld [vmem:[%s340_s0] sm:$0xff]  ;;  %v27_v1 = vld [vmem:[%s340_s0 + $0x8] sm:$0xff] }
   0x2   :  { %v31_v2 = vsel %vm30_vm0, %v26_v0, 0.0 }
   0x3   :  { %32 = vadd.xlane.f32.xlu0 %v31_v2 }
   0x4   :  { %12 = vsyncpa [#allocation6], 0  ;;  %v34_v3 = vsel %vm30_vm0, %v27_v1, 0.0  ;;  %v199_v14 = vld [vmem:[%s343_s3] sm:$0xff]   ;;  %v253_v15 = vmov 0.0   ;;  %vm254_vm1 = vmmov 0  }
   0x5   :  { %185 = vmatprep.subr.bf16.mxu0 %v253_v15  ;;  %189 = vmatprep.mubr.msk.bf16.mxu0 %vm254_vm1, %v253_v15  ;;  %v200_v16 = vld [vmem:[%s343_s3 + $0x8] sm:$0xff]   ;;  %v177_v24 = vld [vmem:[%s341_s1] ss:$0 sm:$0xff]  ;;  %s255_s1 = smov [#allocation5]  }
   0x6   :  { %186 = vmatpush3.bf16.msra.mxu0 %v199_v14  ;;  %v178_v26 = vld [vmem:[%s342_s2] ss:$0 sm:$0xff]  ;;  %s162_s2 = sshll.u32 %s255_s1, 4  ;;  %s163_s2 = int_to_ptr.vmem [resolvable:$true] %s162_s2 }
   0x7   :  { %35 = vadd.xlane.f32.xlu0 %v34_v3  ;;  %187 = vmatprep.subr.bf16.mxu0 %v253_v15  ;;  %s205_s3 = scalar_lea.vmem %s163_s2, 256  ;;  %p210_p1 = scmp.lt.s32.totalorder %s163_s2, %s163_s2 }
   0x8   :  { %p206_p0 = scmp.ne.s32.totalorder %s163_s2, %s205_s3  ;;  %p211_p2 = scmp.lt.s32.totalorder %s205_s3, %s205_s3 }
   0xa   :  { %188 = vmatpush3.bf16.msra.mxu0 %v200_v16  ;;  %p212_p3 = por %p211_p2, %p210_p1 }
   0xc   :  { %p213_p4 = pnand %p212_p3, %p206_p0 }
  0x90   :  { %v33_v4 = vpop.xlane.xlu0 %32 }
  0x91   :  { %v38_v5 = vmul.f32 0.03125, %v33_v4 }
  0x93   :  { %v40_v6 = vsub.f32 %v26_v0, %v38_v5 }
  0x94   :  { %v36_v7 = vpop.xlane.xlu0 %35 }
  0x95   :  { %v39_v8 = vmul.f32 0.03125, %v36_v7  ;;  %v42_v9 = vmul.f32 %v40_v6, %v40_v6 }
  0x97   :  { %v41_v10 = vsub.f32 %v27_v1, %v39_v8  ;;  %v44_v11 = vsel %vm30_vm0, %v42_v9, 0.0 }
  0x98   :  { %45 = vadd.xlane.f32.xlu1 %v44_v11 }
  0x99   :  { %v43_v12 = vmul.f32 %v41_v10, %v41_v10 }
  0x9b   :  { %v47_v13 = vsel %vm30_vm0, %v43_v12, 0.0 }
  0x9c   :  { %48 = vadd.xlane.f32.xlu1 %v47_v13 }
 0x125   :  { %v46_v17 = vpop.xlane.xlu1 %45 }
 0x126   :  { %v50_v18 = vmul.f32 0.03125, %v46_v17 }
 0x128   :  { %v52_v19 = vadd.f32 1e-05, %v50_v18 }
 0x129   :  { %v49_v20 = vpop.xlane.xlu1 %48 }
 0x12a   :  { %201 = vrsqrt.f32 %v52_v19  ;;  %v51_v21 = vmul.f32 0.03125, %v49_v20 }
 0x12c   :  { %v53_v22 = vadd.f32 1e-05, %v51_v21 }
 0x12e   :  { %203 = vrsqrt.f32 %v53_v22 }
 0x134   :  { %v202_v23 = vpop.eup %201 }
 0x135   :  { %v56_v25 = vmul.f32 %v202_v23, %v40_v6 }
 0x137   :  { %v64_v27 = vmul.f32 %v177_v24, %v56_v25 }
 0x138   :  { %v204_v28 = vpop.eup %203 }
 0x139   :  { %v72_v29 = vadd.f32 %v178_v26, %v64_v27  ;;  %v57_v30 = vmul.f32 %v204_v28, %v41_v10 }
 0x13b   :  { %74 = vst.msk [vmem:[#allocation2] sm:$0xff] %vm30_vm0, %v72_v29  ;;  %76 = vst.msk [vmem:[#allocation5] sm:$0xff] %vm30_vm0, %v72_v29  ;;  %v65_v31 = vmul.f32 %v177_v24, %v57_v30 }
 0x13d   :  { %v73_v32 = vadd.f32 %v178_v26, %v65_v31 }
 0x13f   :  { %75 = vst.msk [vmem:[#allocation2 + $0x8] sm:$0xff] %vm30_vm0, %v73_v32  ;;  %77 = vst.msk [vmem:[#allocation5 + $0x8] sm:$0xff] %vm30_vm0, %v73_v32 }
 0x142   :  { %v78_v33 = vld [vmem:[#allocation2] sm:$0xff] }
 0x146   :  { %v79_v34 = vld [vmem:[#allocation2 + $0x8] sm:$0xff] }
 0x147   :  { %v80_v35 = vpack.c.bf16 %v79_v34, %v78_v33 }
 0x149   :  { %190 = vmatmul.mubr.msk.bf16.vlgmr.msra.gmra.mrb[0].mxu0 %vm30_vm0, %v80_v35 }
 0x14a   :  { %216 = shalt.err (!%p213_p4)
}
 0x14b   :  { %s217_s6 = scalar_lea.hbm %s345_s5, 256 }
 0x14c   :  { %p218_p5 = scmp.ne.s32.totalorder %s345_s5, %s217_s6  ;;  %p221_p6 = scmp.lt.u32.totalorder %s217_s6, %s345_s5 }
 0x14e   :  { %p223_p7 = pnand %p221_p6, %p218_p5 }
 0x150   :  { %226 = shalt.err (!%p223_p7)
}
 0x151   :  { %s256_s11 = smov 128   ;;  %s257_s12 = smov 8   ;;  %vm142_vm2 = vcmask 523264  }
 0x152   :  { %168 = dma.vmem_to_hbm [thread:$0]  %s163_s2, 256, %s345_s5, [#allocation6], %s256_s11, %s256_s11, %s257_s12  }
 0x153   :  { %s258_s15 = smov [#allocation3]  }
 0x154   :  { %s150_s16 = sshll.u32 %s258_s15, 4  ;;  %s151_s16 = int_to_ptr.vmem [resolvable:$true] %s150_s16 }
 0x155   :  { %s227_s17 = scalar_lea.vmem %s151_s16, 256  ;;  %p232_p9 = scmp.lt.s32.totalorder %s151_s16, %s151_s16 }
 0x156   :  { %p228_p8 = scmp.ne.s32.totalorder %s151_s16, %s227_s17  ;;  %p233_p10 = scmp.lt.s32.totalorder %s227_s17, %s227_s17 }
 0x158   :  { %p234_p11 = por %p233_p10, %p232_p9 }
 0x15a   :  { %p235_p12 = pnand %p234_p11, %p228_p8 }
 0x21c   :  { %v135_v36 = vpop.f32.mrb[0].mxu0 }
 0x21d   :  { %143 = vst.msk [vmem:[#allocation3] sm:$0xff] %vm142_vm2, %v135_v36  ;;  %v191_v37 = vpop.f32.mrb[1].mxu0 }
 0x21e   :  { %v138_v38 = vpop.f32.mrb[2].mxu0 }
 0x21f   :  { %144 = vst.msk [vmem:[#allocation3 + $0x8] sm:$0xff] %vm142_vm2, %v138_v38  ;;  %v192_v39 = vpop.f32.mrb[3].mxu0 }
 0x220   :  { %238 = shalt.err (!%p235_p12)
}
 0x221   :  { %s239_s5 = scalar_lea.hbm %s344_s4, 256 }
 0x222   :  { %p240_p13 = scmp.ne.s32.totalorder %s344_s4, %s239_s5  ;;  %p243_p0 = scmp.lt.u32.totalorder %s239_s5, %s344_s4 }
 0x224   :  { %p245_p1 = pnand %p243_p0, %p240_p13 }
 0x226   :  { %248 = shalt.err (!%p245_p1)
}
 0x227   :  { %156 = dma.vmem_to_hbm [thread:$0]  %s151_s16, 256, %s344_s4, [#allocation4], %s256_s11, %s256_s11, %s257_s12  }
 0x228   :  { %249 = dma.done.wait [#allocation4], 256  }
 0x229   :  { %250 = vsyncadd [#allocation4], 4294967040 }
 0x22a   :  { %251 = dma.done.wait [#allocation6], 256  }
 0x22b   :  { %252 = vsyncadd [#allocation6], 4294967040 }
 0x22c   :  { %175 = vsyncpa [#allocation4], 1 }
 0x22d   :  { %176 = vsyncpa [#allocation6], 1 }

// kernel: rwkv_forward.2
= control target key start
LH: loop header
LB: loop body
LE: loop exit
PB: predicated region body
PF: predicated region fallthrough
CT: control target
= control target key end

     0   :  { %s2800_s30 = smov 0   ;;  %s2802_s10 = smov 0   ;;  %s3665_s0 = inlined_call_operand.vmem [shape: f32[1,64,32], index: 0, kind: input, shape index: {}]   ;;  %s3666_s1 = inlined_call_operand.vmem [shape: f32[2,16,32], index: 1, kind: input, shape index: {}]   ;;  %s3667_s2 = inlined_call_operand.vmem [shape: bf16[2,32,32], index: 2, kind: input, shape index: {}]   ;;  %s3668_s3 = inlined_call_operand.vmem [shape: bf16[2,32,32], index: 3, kind: input, shape index: {}]   ;;  %s3669_s4 = inlined_call_operand.vmem [shape: bf16[2,32,32], index: 4, kind: input, shape index: {}]   ;;  %s3670_s5 = inlined_call_operand.vmem [shape: bf16[2,32,32], index: 5, kind: input, shape index: {}]   ;;  %s3671_s6 = inlined_call_operand.vmem [shape: bf16[2,32,64], index: 6, kind: input, shape index: {}]   ;;  %s3672_s7 = inlined_call_operand.vmem [shape: bf16[2,64,32], index: 7, kind: input, shape index: {}]   ;;  %s3673_s8 = inlined_call_operand.vmem [shape: bf16[2,32,32], index: 8, kind: input, shape index: {}]   ;;  %s3674_s9 = inlined_call_operand.vmem [shape: f32[1,64,32], index: 9, kind: output, shape index: {}]  }
   0x1   :  { %3675 = sst [smem:[#allocation4_spill]] %s3666_s1  ;;  %s2804_s11 = smov 0  }
   0x2   :  { %3676 = sst [smem:[#allocation5_spill]] %s3667_s2 }
   0x3 LB: > { %s28_s12 = sadd.s32 1, %s2744_s10  ;;  %p2279_p0 = scmp.ge.s32.totalorder %s2748_s11, 1  ;;  %s2748_s11 = sphi %s2804_s11, %s19_s11   ;;  %s2744_s10 = sphi %s2802_s10, %s3680_s10   ;;  %s2740_s30 = sphi %s2800_s30, %s3679_s30  }
   0x4   : > { %p29_p1 = scmp.ge.s32.totalorder %s28_s12, 2  ;;  %p379_p2 = scmp.lt.s32.totalorder %s2748_s11, 3 }
   0x6   : > { %s3682_s12 = smov (%p29_p1, %s28_s12), 0  ;;  %p380_p3 = pnand %p2279_p0, %p379_p2 }
   0x7   : > { %p460_p4 = scmp.lt.s32.totalorder (!%p380_p3), %s2740_s30, 1  ;;  %s3677_s1 = sld [smem:[#allocation4_spill]] (!%p380_p3) }
   0x8   : > { %383 = sbr.rel (%p380_p3) target bundleno = 1643 (0x66b), region = 56  ;;  %s3678_s2 = sld [smem:[#allocation5_spill]] (!%p380_p3) }
   0x9   : > { %p2296_p5 = scmp.ne.s32.totalorder (!%p380_p3), %s2740_s30, 0 }
   0xf   : > { %s461_s13 = scalar_select %p460_p4, %s2740_s30, 1 }
  0x10   : > { %509 = sbr.rel (%p2296_p5) target bundleno = 23 (0x17), region = 60  ;;  %v510_v0 = vld [vmem:[%s3665_s0] sm:$0xff] (!%p2296_p5)  ;;  %vm518_vm0 = vcmask (!%p2296_p5), 261120   ;;  %v511_v1 = vld [vmem:[%s3665_s0 + $0x8] sm:$0xff] (!%p2296_p5)  ;;  %v512_v2 = vld [vmem:[%s3665_s0 + $0x10] sm:$0xff] (!%p2296_p5) }
  0x11   : > { %s2360_s14 = sshll.u32 %s461_s13, 4  ;;  %s2366_s15 = sshll.u32 %s461_s13, 5  ;;  %519 = vst.msk [vmem:[%s3674_s9] sm:$0xff] (!%p2296_p5), %vm518_vm0, %v510_v0  ;;  %520 = vst.msk [vmem:[%s3674_s9 + $0x8] sm:$0xff] (!%p2296_p5), %vm518_vm0, %v511_v1  ;;  %v513_v3 = vld [vmem:[%s3665_s0 + $0x18] sm:$0xff] (!%p2296_p5)  ;;  %v514_v4 = vld [vmem:[%s3665_s0 + $0x20] sm:$0xff] (!%p2296_p5) }
  0x12   : > { %s2821_s18 = scalar_lea.vmem %s3677_s1, %s2360_s14  ;;  %s2826_s21 = scalar_lea.vmem %s3678_s2, %s2360_s14  ;;  %521 = vst.msk [vmem:[%s3674_s9 + $0x10] sm:$0xff] (!%p2296_p5), %vm518_vm0, %v512_v2  ;;  %v515_v5 = vld [vmem:[%s3665_s0 + $0x28] sm:$0xff] (!%p2296_p5)  ;;  %522 = vst.msk [vmem:[%s3674_s9 + $0x18] sm:$0xff] (!%p2296_p5), %vm518_vm0, %v513_v3  ;;  %v516_v6 = vld [vmem:[%s3665_s0 + $0x30] sm:$0xff] (!%p2296_p5) }
  0x13   : > { %s2831_s24 = scalar_lea.vmem %s3668_s3, %s2360_s14  ;;  %s2836_s27 = scalar_lea.vmem %s3669_s4, %s2360_s14  ;;  %523 = vst.msk [vmem:[%s3674_s9 + $0x20] sm:$0xff] (!%p2296_p5), %vm518_vm0, %v514_v4  ;;  %524 = vst.msk [vmem:[%s3674_s9 + $0x28] sm:$0xff] (!%p2296_p5), %vm518_vm0, %v515_v5  ;;  %v517_v7 = vld [vmem:[%s3665_s0 + $0x38] sm:$0xff] (!%p2296_p5) }
  0x14   : > { %s2841_s13 = scalar_lea.vmem %s3670_s5, %s2360_s14  ;;  %s2846_s19 = scalar_lea.vmem %s3671_s6, %s2360_s14  ;;  %525 = vst.msk [vmem:[%s3674_s9 + $0x30] sm:$0xff] (!%p2296_p5), %vm518_vm0, %v516_v6  ;;  %526 = vst.msk [vmem:[%s3674_s9 + $0x38] sm:$0xff] (!%p2296_p5), %vm518_vm0, %v517_v7 }
  0x15   : > { %s2851_s22 = scalar_lea.vmem %s3672_s7, %s2366_s15  ;;  %s2856_s25 = scalar_lea.vmem %s3673_s8, %s2360_s14 }
  0x17 PF: > { %vm554_vm1 = vcmask 261120   ;;  %v2528_v0 = vld [vmem:[%s2826_s21] sm:$0xff]   ;;  %v2529_v1 = vld [vmem:[%s2826_s21 + $0x8] sm:$0xff]   ;;  %v660_v6 = vlaneseq  ;;  %vm2013_vm2 = vcmask 523264  }
  0x18   : > { %v529_v8 = vld [vmem:[%s3674_s9] sm:$0xff]  ;;  %v530_v10 = vld [vmem:[%s3674_s9 + $0x8] sm:$0xff]  ;;  %2412 = vmatprep.subr.bf16.mxu0 %v2528_v0  ;;  %2500 = vmatprep.subr.bf16.mxu1 %v2528_v0 }
  0x19   : > { %v531_v9 = vld [vmem:[%s3674_s9 + $0x10] sm:$0xff]  ;;  %v555_v11 = vsel %vm554_vm1, %v529_v8, 0.0  ;;  %v532_v13 = vld [vmem:[%s3674_s9 + $0x18] sm:$0xff]  ;;  %v558_v16 = vsel %vm554_vm1, %v530_v10, 0.0  ;;  %2413 = vmatpush3.bf16.msra.mxu0 %v2528_v0  ;;  %2502 = vmatpush3.bf16.msra.mxu1 %v2528_v0  ;;  %v2981_v2 = vld [vmem:[%s2836_s27] sm:$0xff]  }
  0x1a   : > { %v561_v12 = vsel %vm554_vm1, %v531_v9, 0.0  ;;  %v533_v14 = vld [vmem:[%s3674_s9 + $0x20] sm:$0xff]  ;;  %v534_v15 = vld [vmem:[%s3674_s9 + $0x28] sm:$0xff]  ;;  %556 = vadd.xlane.f32.xlu0 %v555_v11  ;;  %v564_v17 = vsel %vm554_vm1, %v532_v13, 0.0  ;;  %2414 = vmatprep.subr.bf16.mxu0 %v2529_v1 }
  0x1b   : > { %562 = vadd.xlane.f32.xlu1 %v561_v12  ;;  %v567_v18 = vsel %vm554_vm1, %v533_v14, 0.0  ;;  %v570_v19 = vsel %vm554_vm1, %v534_v15, 0.0  ;;  %v535_v20 = vld [vmem:[%s3674_s9 + $0x30] sm:$0xff]  ;;  %v536_v21 = vld [vmem:[%s3674_s9 + $0x38] sm:$0xff]  ;;  %2501 = vmatprep.subr.bf16.mxu1 %v2529_v1  ;;  %v2985_v3 = vld [vmem:[%s2831_s24] sm:$0xff]   ;;  %v2988_v12 = vshrl.u32 %v660_v6, 7 }
  0x1c   : > { %v573_v22 = vsel %vm554_vm1, %v535_v20, 0.0  ;;  %v576_v23 = vsel %vm554_vm1, %v536_v21, 0.0 }
  0x1d   : > { %2415 = vmatpush3.bf16.msra.mxu0 %v2529_v1  ;;  %2503 = vmatpush3.bf16.msra.mxu1 %v2529_v1 }
  0x1e   : > { %559 = vadd.xlane.f32.xlu0 %v558_v16  ;;  %2436 = vmatprep.subr.bf16.mxu0 %v2981_v2 }
  0x1f   : > { %565 = vadd.xlane.f32.xlu1 %v564_v17  ;;  %2424 = vmatprep.subr.bf16.mxu1 %v2985_v3 }
  0x22   : > { %568 = vadd.xlane.f32.xlu0 %v567_v18 }
  0x23   : > { %571 = vadd.xlane.f32.xlu1 %v570_v19  ;;  %v662_v19 = vsub.s32 0, %v2988_v12 }
  0x26   : > { %574 = vadd.xlane.f32.xlu0 %v573_v22 }
  0x27   : > { %577 = vadd.xlane.f32.xlu1 %v576_v23  ;;  %v674_v23 = vsub.s32 1, %v2988_v12 }
  0xa7   : > { %v557_v24 = vpop.xlane.xlu0 %556 }
  0xa8   : > { %v563_v25 = vpop.xlane.xlu1 %562  ;;  %v580_v26 = vmul.f32 0.03125, %v557_v24 }
  0xa9   : > { %v582_v27 = vmul.f32 0.03125, %v563_v25 }
  0xaa   : > { %v2938_v28 = vsub.f32 %v529_v8, %v580_v26 }
  0xab   : > { %v2940_v29 = vsub.f32 %v531_v9, %v582_v27  ;;  %v560_v30 = vpop.xlane.xlu0 %559 }
  0xac   : > { %v566_v31 = vpop.xlane.xlu1 %565  ;;  %v581_v32 = vmul.f32 0.03125, %v560_v30  ;;  %v596_v34 = vmul.f32 %v2938_v28, %v2938_v28 }
  0xad   : > { %v583_v33 = vmul.f32 0.03125, %v566_v31  ;;  %v598_v35 = vmul.f32 %v2940_v29, %v2940_v29  ;;  %v706_v31 = vsub.s32 5, %v2988_v12 }
  0xae   : > { %v2946_v36 = vsub.f32 %v530_v10, %v581_v32  ;;  %v604_v38 = vsel %vm554_vm1, %v596_v34, 0.0 }
  0xaf   : > { %v2948_v37 = vsub.f32 %v532_v13, %v583_v33  ;;  %605 = vadd.xlane.f32.xlu0 %v604_v38  ;;  %v569_v39 = vpop.xlane.xlu0 %568  ;;  %v610_v41 = vsel %vm554_vm1, %v598_v35, 0.0  ;;  %v694_v35 = vsub.s32 4, %v2988_v12  ;;  %v738_v38 = vsub.s32 7, %v2988_v12 }
  0xb0   : > { %v572_v40 = vpop.xlane.xlu1 %571  ;;  %v584_v42 = vmul.f32 0.03125, %v569_v39  ;;  %v597_v44 = vmul.f32 %v2946_v36, %v2946_v36 }
  0xb1   : > { %v585_v43 = vmul.f32 0.03125, %v572_v40  ;;  %v599_v45 = vmul.f32 %v2948_v37, %v2948_v37 }
  0xb2   : > { %v2956_v46 = vsub.f32 %v533_v14, %v584_v42  ;;  %v607_v48 = vsel %vm554_vm1, %v597_v44, 0.0  ;;  %v3002_v42 = vld [vmem:[%s2821_s18 + $0x8] sm:$0xff]  ;;  %v726_v44 = vsub.s32 6, %v2988_v12 }
  0xb3   : > { %v2958_v47 = vsub.f32 %v534_v15, %v585_v43  ;;  %611 = vadd.xlane.f32.xlu0 %v610_v41  ;;  %608 = vadd.xlane.f32.xlu1 %v607_v48  ;;  %v575_v49 = vpop.xlane.xlu0 %574  ;;  %v613_v51 = vsel %vm554_vm1, %v599_v45, 0.0 }
  0xb4   : > { %v578_v50 = vpop.xlane.xlu1 %577  ;;  %v586_v52 = vmul.f32 0.03125, %v575_v49  ;;  %v600_v54 = vmul.f32 %v2956_v46, %v2956_v46 }
  0xb5   : > { %v587_v53 = vmul.f32 0.03125, %v578_v50  ;;  %v601_v55 = vmul.f32 %v2958_v47, %v2958_v47 }
  0xb6   : > { %v2966_v56 = vsub.f32 %v535_v20, %v586_v52  ;;  %v616_v58 = vsel %vm554_vm1, %v600_v54, 0.0  ;;  %v527_v20 = vld [vmem:[%s2821_s18] sm:$0xff] }
  0xb7   : > { %v2968_v57 = vsub.f32 %v536_v21, %v587_v53  ;;  %614 = vadd.xlane.f32.xlu1 %v613_v51  ;;  %617 = vadd.xlane.f32.xlu0 %v616_v58  ;;  %v619_v59 = vsel %vm554_vm1, %v601_v55, 0.0  ;;  %v2993_v30 = vrot.slane %v527_v20, %v662_v19  ;;  %v2999_v40 = vrot.slane %v527_v20, %v674_v23 }
  0xb8   : > { %v602_v60 = vmul.f32 %v2966_v56, %v2966_v56  ;;  %v3008_v48 = vrot.slane %v527_v20, %v706_v31  ;;  %v3015_v51 = vrot.slane %v3002_v42, %v674_v23  ;;  %v3019_v52 = vrot.slane %v527_v20, %v738_v38 }
  0xb9   : > { %v603_v61 = vmul.f32 %v2968_v57, %v2968_v57  ;;  %v3024_v58 = vrot.slane %v3002_v42, %v662_v19 }
  0xba   : > { %v622_v62 = vsel %vm554_vm1, %v602_v60, 0.0  ;;  %v3029_v60 = vrot.slane %v527_v20, %v726_v44 }
  0xbb   : > { %620 = vadd.xlane.f32.xlu1 %v619_v59  ;;  %623 = vadd.xlane.f32.xlu0 %v622_v62  ;;  %v625_v63 = vsel %vm554_vm1, %v603_v61, 0.0  ;;  %v708_v62 = vmul.f32 0.0, %v3008_v48 }
  0xbf   : > { %626 = vadd.xlane.f32.xlu1 %v625_v63 }
 0x13c   : > { %v606_v4 = vpop.xlane.xlu0 %605 }
 0x13d   : > { %v628_v5 = vmul.f32 0.03125, %v606_v4  ;;  %v3037_v4 = vmul.f32 0.0, %v3019_v52 }
 0x13f   : > { %v636_v7 = vadd.f32 1e-05, %v628_v5 }
 0x140   : > { %v609_v8 = vpop.xlane.xlu1 %608  ;;  %v612_v9 = vpop.xlane.xlu0 %611 }
 0x141   : > { %2544 = vrsqrt.f32 %v636_v7  ;;  %v629_v10 = vmul.f32 0.03125, %v609_v8  ;;  %v630_v11 = vmul.f32 0.03125, %v612_v9 }
 0x143   : > { %v637_v13 = vadd.f32 1e-05, %v629_v10  ;;  %v638_v14 = vadd.f32 1e-05, %v630_v11 }
 0x144   : > { %v615_v15 = vpop.xlane.xlu1 %614  ;;  %v618_v16 = vpop.xlane.xlu0 %617 }
 0x145   : > { %2546 = vrsqrt.f32 %v637_v13  ;;  %v631_v17 = vmul.f32 0.03125, %v615_v15  ;;  %v632_v18 = vmul.f32 0.03125, %v618_v16 }
 0x146   : > { %2548 = vrsqrt.f32 %v638_v14 }
 0x147   : > { %v639_v21 = vadd.f32 1e-05, %v631_v17  ;;  %v640_v22 = vadd.f32 1e-05, %v632_v18 }
 0x148   : > { %v621_v24 = vpop.xlane.xlu1 %620  ;;  %v624_v25 = vpop.xlane.xlu0 %623 }
 0x149   : > { %2550 = vrsqrt.f32 %v639_v21  ;;  %v633_v26 = vmul.f32 0.03125, %v621_v24  ;;  %v634_v27 = vmul.f32 0.03125, %v624_v25 }
 0x14a   : > { %2552 = vrsqrt.f32 %v640_v22 }
 0x14b   : > { %v2545_v32 = vpop.eup %2544  ;;  %v641_v33 = vadd.f32 1e-05, %v633_v26  ;;  %v642_v34 = vadd.f32 1e-05, %v634_v27 }
 0x14c   : > { %v652_v39 = vmul.f32 %v2545_v32, %v2938_v28  ;;  %v627_v41 = vpop.xlane.xlu1 %626  ;;  %v3012_v28 = vrot.slane %v527_v20, %v694_v35 }
 0x14d   : > { %2554 = vrsqrt.f32 %v641_v33  ;;  %v635_v43 = vmul.f32 0.03125, %v627_v41 }
 0x14e   : > { %v664_v45 = vmul.f32 %v2993_v30, %v652_v39  ;;  %2556 = vrsqrt.f32 %v642_v34 }
 0x14f   : > { %v2547_v49 = vpop.eup %2546  ;;  %v643_v50 = vadd.f32 1e-05, %v635_v43 }
 0x150   : > { %v2549_v53 = vpop.eup %2548  ;;  %v676_v54 = vadd.f32 %v2999_v40, %v664_v45  ;;  %v653_v55 = vmul.f32 %v2547_v49, %v2946_v36  ;;  %v772_v36 = vmul.f32 0.0, %v3015_v51 }
 0x151   : > { %v654_v59 = vmul.f32 %v2549_v53, %v2940_v29  ;;  %2558 = vrsqrt.f32 %v643_v50 }
 0x152   : > { %v665_v61 = vmul.f32 %v2993_v30, %v653_v55  ;;  %v696_v1 = vmul.f32 %v3012_v28, %v676_v54  ;;  %v709_v7 = vmul.f32 %v3008_v48, %v676_v54  ;;  %v760_v8 = vmul.f32 %v3024_v58, %v676_v54 }
 0x153   : > { %v2551_v63 = vpop.eup %2550  ;;  %v666_v0 = vmul.f32 %v2993_v30, %v654_v59  ;;  %v773_v11 = vmul.f32 %v3015_v51, %v676_v54  ;;  %v728_v13 = vmul.f32 %v3029_v60, %v676_v54  ;;  %v741_v16 = vmul.f32 %v3019_v52, %v676_v54 }
 0x154   : > { %v2553_v29 = vpop.eup %2552  ;;  %v3040_v5 = vadd.f32 %v2999_v40, %v665_v61  ;;  %v655_v6 = vmul.f32 %v2551_v63, %v2948_v37  ;;  %v716_v19 = vadd.f32 %v708_v62, %v696_v1  ;;  %v780_v25 = vadd.f32 %v772_v36, %v760_v8 }
 0x155   : > { %v3046_v9 = vadd.f32 %v2999_v40, %v666_v0  ;;  %v656_v10 = vmul.f32 %v2553_v29, %v2956_v46 }
 0x156   : > { %v667_v14 = vmul.f32 %v2993_v30, %v655_v6  ;;  %v697_v15 = vmul.f32 %v3012_v28, %v3040_v5  ;;  %v761_v37 = vmul.f32 %v3024_v58, %v3040_v5  ;;  %v710_v20 = vmul.f32 %v3008_v48, %v3040_v5  ;;  %v2531_v6 = vld [vmem:[%s2836_s27 + $0x8] sm:$0xff]  }
 0x157   : > { %v2555_v17 = vpop.eup %2554  ;;  %v668_v18 = vmul.f32 %v2993_v30, %v656_v10  ;;  %v698_v46 = vmul.f32 %v3012_v28, %v3046_v9  ;;  %v711_v32 = vmul.f32 %v3008_v48, %v3046_v9  ;;  %v774_v59 = vmul.f32 %v3015_v51, %v3040_v5 }
 0x158   : > { %v2557_v21 = vpop.eup %2556  ;;  %v3063_v22 = vadd.f32 %v2999_v40, %v667_v14  ;;  %v657_v23 = vmul.f32 %v2555_v17, %v2958_v47  ;;  %v717_v24 = vadd.f32 %v709_v7, %v697_v15  ;;  %v781_v33 = vadd.f32 %v773_v11, %v761_v37 }
 0x159   : > { %v3067_v26 = vadd.f32 %v2999_v40, %v668_v18  ;;  %v658_v27 = vmul.f32 %v2557_v21, %v2966_v56  ;;  %v762_v47 = vmul.f32 %v3024_v58, %v3046_v9  ;;  %v718_v49 = vadd.f32 %v710_v20, %v698_v46 }
 0x15a   : > { %v669_v34 = vmul.f32 %v2993_v30, %v657_v23  ;;  %v788_v39 = vpack.c.bf16 %v717_v24, %v716_v19  ;;  %v699_v41 = vmul.f32 %v3012_v28, %v3063_v22  ;;  %v712_v50 = vmul.f32 %v3008_v48, %v3063_v22 }
 0x15b   : > { %v2559_v43 = vpop.eup %2558  ;;  %v670_v45 = vmul.f32 %v2993_v30, %v658_v27  ;;  %v700_v56 = vmul.f32 %v3012_v28, %v3067_v26  ;;  %v998_v62 = vpack.c.bf16 %v781_v33, %v780_v25  ;;  %v713_v63 = vmul.f32 %v3008_v48, %v3067_v26 }
 0x15c   : > { %v3083_v53 = vadd.f32 %v2999_v40, %v669_v34  ;;  %v659_v54 = vmul.f32 %v2559_v43, %v2968_v57  ;;  %2416 = vmatprep.mubr.msk.bf16.mxu0 %vm554_vm1, %v788_v39  ;;  %v719_v55 = vadd.f32 %v711_v32, %v699_v41  ;;  %v763_v0 = vmul.f32 %v3024_v58, %v3063_v22  ;;  %v2533_v34 = vld [vmem:[%s2831_s24 + $0x8] sm:$0xff]  }
 0x15d   : > { %v3090_v61 = vadd.f32 %v2999_v40, %v670_v45  ;;  %v720_v29 = vadd.f32 %v712_v50, %v700_v56  ;;  %v775_v10 = vmul.f32 %v3015_v51, %v3046_v9  ;;  %v729_v11 = vmul.f32 %v3029_v60, %v3040_v5 }
 0x15e   : > { %v671_v1 = vmul.f32 %v2993_v30, %v659_v54  ;;  %v789_v36 = vpack.c.bf16 %v719_v55, %v718_v49  ;;  %v701_v57 = vmul.f32 %v3012_v28, %v3083_v53  ;;  %v714_v8 = vmul.f32 %v3008_v48, %v3083_v53 }
 0x15f   : > { %v702_v7 = vmul.f32 %v3012_v28, %v3090_v61  ;;  %v715_v15 = vmul.f32 %v3008_v48, %v3090_v61  ;;  %v765_v37 = vmul.f32 %v3024_v58, %v3083_v53  ;;  %v783_v17 = vadd.f32 %v775_v10, %v763_v0 }
 0x160   : > { %2417 = vmatmul.mubr.msk.bf16.vlgmr.msra.gmra.mrb[0].mxu0 %vm554_vm1, %v789_v36  ;;  %v721_v30 = vadd.f32 %v713_v63, %v701_v57  ;;  %v683_v14 = vadd.f32 %v2999_v40, %v671_v1  ;;  %v749_v18 = vadd.f32 %v741_v16, %v729_v11  ;;  %v764_v19 = vmul.f32 %v3024_v58, %v3067_v26 }
 0x161   : > { %2437 = vmatpush3.bf16.msra.mxu0 %v2981_v2  ;;  %2440 = vmatprep.mubr.msk.bf16.mxu0 %vm554_vm1, %v998_v62  ;;  %v776_v48 = vmul.f32 %v3015_v51, %v3063_v22  ;;  %v777_v20 = vmul.f32 %v3015_v51, %v3067_v26  ;;  %v782_v21 = vadd.f32 %v774_v59, %v762_v47 }
 0x162   : > { %v790_v46 = vpack.c.bf16 %v721_v30, %v720_v29  ;;  %2438 = vmatprep.subr.bf16.mxu0 %v2531_v6  ;;  %v703_v40 = vmul.f32 %v3012_v28, %v683_v14  ;;  %v748_v2 = vadd.f32 %v3037_v4, %v728_v13  ;;  %v722_v16 = vadd.f32 %v714_v8, %v702_v7  ;;  %v2534_v7 = vld [vmem:[%s2841_s13] sm:$0xff]   ;;  %v2535_v8 = vld [vmem:[%s2841_s13 + $0x8] sm:$0xff]  }
 0x163   : > { %v785_v24 = vadd.f32 %v777_v20, %v765_v37  ;;  %v999_v25 = vpack.c.bf16 %v783_v17, %v782_v21  ;;  %v730_v28 = vmul.f32 %v3029_v60, %v3046_v9  ;;  %v784_v33 = vadd.f32 %v776_v48, %v764_v19 }
 0x164   : > { %2420 = vmatprep.mubr.msk.bf16.mxu1 %vm554_vm1, %v790_v46  ;;  %v723_v23 = vadd.f32 %v715_v15, %v703_v40  ;;  %v893_v27 = vpack.c.bf16 %v749_v18, %v748_v2  ;;  %v731_v39 = vmul.f32 %v3029_v60, %v3063_v22  ;;  %v767_v41 = vmul.f32 %v3024_v58, %v683_v14 }
 0x165   : > { %2439 = vmatpush3.bf16.msra.mxu0 %v2531_v6  ;;  %v742_v4 = vmul.f32 %v3019_v52, %v3040_v5  ;;  %v743_v13 = vmul.f32 %v3019_v52, %v3046_v9  ;;  %v766_v47 = vmul.f32 %v3024_v58, %v3090_v61  ;;  %v733_v43 = vmul.f32 %v3029_v60, %v3083_v53 }
 0x166   : > { %v791_v32 = vpack.c.bf16 %v723_v23, %v722_v16  ;;  %v1000_v45 = vpack.c.bf16 %v785_v24, %v784_v33  ;;  %v778_v49 = vmul.f32 %v3015_v51, %v3083_v53  ;;  %v779_v5 = vmul.f32 %v3015_v51, %v3090_v61 }
 0x167   : > { %v732_v58 = vmul.f32 %v3029_v60, %v3067_v26  ;;  %v744_v9 = vmul.f32 %v3019_v52, %v3063_v22  ;;  %v745_v56 = vmul.f32 %v3019_v52, %v3067_v26  ;;  %v751_v50 = vadd.f32 %v743_v13, %v731_v39 }
 0x168   : > { %2421 = vmatmul.mubr.msk.bf16.vlgmr.msra.gmra.mrb[0].mxu1 %vm554_vm1, %v791_v32  ;;  %2441 = vmatmul.mubr.msk.bf16.vlgmr.msra.gmra.mrb[4].mxu0 %vm554_vm1, %v999_v25  ;;  %v787_v54 = vadd.f32 %v779_v5, %v767_v41  ;;  %v750_v51 = vadd.f32 %v742_v4, %v730_v28  ;;  %v786_v59 = vadd.f32 %v778_v49, %v766_v47  ;;  %v1147_v48 = vsub.s32 3, %v2988_v12 }
 0x169   : > { %2425 = vmatpush3.bf16.msra.mxu1 %v2985_v3  ;;  %2428 = vmatprep.mubr.msk.bf16.mxu1 %vm554_vm1, %v893_v27  ;;  %v753_v55 = vadd.f32 %v745_v56, %v733_v43  ;;  %v752_v3 = vadd.f32 %v744_v9, %v732_v58  ;;  %v735_v0 = vmul.f32 %v3029_v60, %v683_v14 }
 0x16a   : > { %2444 = vmatprep.mubr.msk.bf16.mxu0 %vm554_vm1, %v1000_v45  ;;  %2426 = vmatprep.subr.bf16.mxu1 %v2533_v34  ;;  %v894_v62 = vpack.c.bf16 %v751_v50, %v750_v51  ;;  %v1001_v63 = vpack.c.bf16 %v787_v54, %v786_v59  ;;  %v734_v26 = vmul.f32 %v3029_v60, %v3090_v61  ;;  %v1166_v60 = vsub.s32 2, %v2988_v12 }
 0x16b   : > { %v895_v22 = vpack.c.bf16 %v753_v55, %v752_v3  ;;  %v746_v1 = vmul.f32 %v3019_v52, %v3083_v53  ;;  %v747_v36 = vmul.f32 %v3019_v52, %v3090_v61  ;;  %v3195_v23 = vrot.slane %v3002_v42, %v1147_v48 }
 0x16c   : > { %v3173_v52 = vrot.slane %v3002_v42, %v1166_v60 }
 0x16d   : > { %2427 = vmatpush3.bf16.msra.mxu1 %v2533_v34  ;;  %v755_v57 = vadd.f32 %v747_v36, %v735_v0  ;;  %v754_v29 = vadd.f32 %v746_v1, %v734_v26 }
 0x16e   : > { %2448 = vmatprep.subr.bf16.mxu1 %v2534_v7  ;;  %v3178_v30 = vadd.f32 -1e+30, %v3173_v52 }
 0x16f   : > { %v896_v6 = vpack.c.bf16 %v755_v57, %v754_v29 }
 0x170   : > { %2429 = vmatmul.mubr.msk.bf16.vlgmr.msra.gmra.mrb[4].mxu1 %vm554_vm1, %v894_v62  ;;  %2445 = vmatmul.mubr.msk.bf16.gmra.mrb[8].mxu0 %vm554_vm1, %v1001_v63 }
 0x171   : > { %2432 = vmatprep.mubr.msk.bf16.mxu1 %vm554_vm1, %v895_v22  ;;  %2449 = vmatpush3.bf16.msra.mxu1 %v2534_v7 }
 0x172   : > { %2450 = vmatprep.subr.bf16.mxu1 %v2535_v8 }
 0x175   : > { %2451 = vmatpush3.bf16.msra.mxu1 %v2535_v8 }
 0x178   : > { %2433 = vmatmul.mubr.msk.bf16.gmra.mrb[8].mxu1 %vm554_vm1, %v896_v6 }
 0x233   : > { %v2418_v10 = vpop.f32.mrb[0].mxu0 }
 0x234   : > { %887 = vst.msk [vmem:[#allocation2 + $0x10] sm:$0xff] %vm554_vm1, %v2418_v10  ;;  %v854_v53 = vpop.f32.mrb[1].mxu0 }
 0x235   : > { %885 = vst.msk [vmem:[#allocation2] sm:$0xff] %vm554_vm1, %v854_v53  ;;  %v2419_v61 = vpop.f32.mrb[2].mxu0 }
 0x236   : > { %888 = vst.msk [vmem:[#allocation2 + $0x18] sm:$0xff] %vm554_vm1, %v2419_v61  ;;  %v857_v11 = vpop.f32.mrb[3].mxu0 }
 0x237   : > { %886 = vst.msk [vmem:[#allocation2 + $0x8] sm:$0xff] %vm554_vm1, %v857_v11 }
 0x23b   : > { %v2422_v14 = vpop.f32.mrb[0].mxu1  ;;  %v2442_v15 = vpop.f32.mrb[4].mxu0  ;;  %v3207_v39 = vld [vmem:[#allocation2 + $0x10] sm:$0xff] }
 0x23c   : > { %v1143_v37 = vld [vmem:[#allocation2] sm:$0xff]  ;;  %891 = vst.msk [vmem:[#allocation2 + $0x30] sm:$0xff] %vm554_vm1, %v2422_v14  ;;  %v870_v17 = vpop.f32.mrb[1].mxu1  ;;  %v1064_v18 = vpop.f32.mrb[5].mxu0  ;;  %v2317_v55 = vmul.f32 -1.442695, %v2442_v15  ;;  %v3242_v57 = vadd.f32 %v3207_v39, %v3195_v23 }
 0x23d   : > { %v3182_v19 = vmax.f32 %v3178_v30, %v1143_v37  ;;  %889 = vst.msk [vmem:[#allocation2 + $0x20] sm:$0xff] %vm554_vm1, %v870_v17  ;;  %v2423_v46 = vpop.f32.mrb[2].mxu1  ;;  %v2443_v40 = vpop.f32.mrb[6].mxu0  ;;  %v1149_v42 = vadd.f32 %v3195_v23, %v1143_v37  ;;  %v2315_v47 = vmul.f32 -1.442695, %v1064_v18  ;;  %v3227_v54 = vld [vmem:[#allocation2 + $0x18] sm:$0xff] }
 0x23e   : > { %892 = vst.msk [vmem:[#allocation2 + $0x38] sm:$0xff] %vm554_vm1, %v2423_v46  ;;  %v873_v20 = vpop.f32.mrb[3].mxu1  ;;  %v3187_v21 = vpop.f32.mrb[7].mxu0  ;;  %v1181_v16 = vld [vmem:[#allocation2 + $0x8] sm:$0xff]  ;;  %v2318_v22 = vmul.f32 -1.442695, %v2443_v40 }
 0x23f   : > { %890 = vst.msk [vmem:[#allocation2 + $0x28] sm:$0xff] %vm554_vm1, %v873_v20  ;;  %v1200_v2 = vadd.f32 %v3182_v19, %v3173_v52  ;;  %v1184_v4 = vadd.f32 %v1181_v16, %v3195_v23  ;;  %v1150_v49 = vmax.f32 %v1149_v42, -1e+30  ;;  %2560 = vpow2.f32 %v2315_v47 }
 0x240   : > { %v1173_v56 = vsub.f32 %v1143_v37, %v3182_v19  ;;  %2562 = vpow2.f32 %v2317_v55  ;;  %v1170_v40 = vsub.f32 %v3178_v30, %v3182_v19 }
 0x241   : > { %v3197_v24 = vmax.f32 %v1200_v2, %v1181_v16  ;;  %v1185_v5 = vmax.f32 %v3182_v19, %v1184_v4  ;;  %v1154_v50 = vsub.f32 %v1149_v42, %v1150_v49  ;;  %2564 = vpow2.f32 %v2318_v22 }
 0x242   : > { %v1174_v1 = vmul.f32 1.442695, %v1173_v56  ;;  %v1151_v17 = vsub.f32 -1e+30, %v1150_v49  ;;  %v1171_v47 = vmul.f32 1.442695, %v1170_v40 }
 0x243   : > { %v2430_v25 = vpop.f32.mrb[4].mxu1  ;;  %v3199_v27 = vpop.f32.mrb[8].mxu0  ;;  %v1233_v28 = vadd.f32 %v3197_v24, %v3173_v52  ;;  %v1186_v59 = vsub.f32 %v3182_v19, %v1185_v5  ;;  %v1189_v63 = vsub.f32 %v1184_v4, %v1185_v5  ;;  %v1202_v36 = vsub.f32 %v1200_v2, %v3197_v24 }
 0x244   : > { %992 = vst.msk [vmem:[#allocation3 + $0x10] sm:$0xff] %vm554_vm1, %v2430_v25  ;;  %v959_v32 = vpop.f32.mrb[5].mxu1  ;;  %v3204_v33 = vpop.f32.mrb[9].mxu0  ;;  %v3235_v0 = vld [vmem:[#allocation2 + $0x20] sm:$0xff]  ;;  %v1155_v29 = vmul.f32 1.442695, %v1154_v50  ;;  %v1205_v6 = vsub.f32 %v1181_v16, %v3197_v24  ;;  %v1218_v11 = vmax.f32 %v3197_v24, %v3242_v57  ;;  %2566 = vpow2.f32 %v1174_v1 }
 0x245   : > { %990 = vst.msk [vmem:[#allocation3] sm:$0xff] %vm554_vm1, %v959_v32  ;;  %v2431_v34 = vpop.f32.mrb[6].mxu1  ;;  %v3211_v41 = vpop.f32.mrb[10].mxu0  ;;  %v3215_v13 = vmax.f32 %v1233_v28, %v3207_v39  ;;  %v1187_v7 = vmul.f32 1.442695, %v1186_v59  ;;  %v1283_v10 = vadd.f32 %v3235_v0, %v3195_v23  ;;  %v1379_v40 = vld [vmem:[#allocation2 + $0x38] sm:$0xff] }
 0x246   : > { %993 = vst.msk [vmem:[#allocation3 + $0x18] sm:$0xff] %vm554_vm1, %v2431_v34  ;;  %v962_v43 = vpop.f32.mrb[7].mxu1  ;;  %v3217_v45 = vpop.f32.mrb[11].mxu0  ;;  %v1190_v61 = vmul.f32 1.442695, %v1189_v63  ;;  %2568 = vpow2.f32 %v1155_v29  ;;  %v3253_v46 = vld [vmem:[#allocation2 + $0x28] sm:$0xff]  ;;  %v1219_v25 = vsub.f32 %v3197_v24, %v1218_v11  ;;  %v1250_v24 = vadd.f32 %v3227_v54, %v3195_v23 }
 0x247   : > { %991 = vst.msk [vmem:[#allocation3 + $0x8] sm:$0xff] %vm554_vm1, %v962_v43  ;;  %v3223_v58 = vadd.f32 %v3215_v13, %v3173_v52  ;;  %v1235_v8 = vsub.f32 %v1233_v28, %v3215_v13  ;;  %v1203_v15 = vmul.f32 1.442695, %v1202_v36  ;;  %v1206_v18 = vmul.f32 1.442695, %v1205_v6 }
 0x248   : > { %2570 = vpow2.f32 %v1187_v7  ;;  %v1316_v32 = vadd.f32 %v3253_v46, %v3195_v23  ;;  %v2316_v34 = vmul.f32 -1.442695, %v3187_v21  ;;  %v1152_v4 = vmul.f32 1.442695, %v1151_v17 }
 0x249   : > { %v3232_v3 = vmax.f32 %v3223_v58, %v3227_v54  ;;  %v2561_v14 = vpop.eup %2560  ;;  %v1236_v20 = vmul.f32 1.442695, %v1235_v8  ;;  %2572 = vpow2.f32 %v1190_v61  ;;  %v1220_v49 = vmul.f32 1.442695, %v1219_v25 }
 0x24a   : > { %v1119_v16 = vadd.f32 1.0, %v2561_v14  ;;  %2574 = vpow2.f32 %v1203_v15  ;;  %v3263_v43 = vpop.eup %2562  ;;  %v1238_v5 = vsub.f32 %v3207_v39, %v3215_v13  ;;  %v1251_v22 = vmax.f32 %v3215_v13, %v1250_v24 }
 0x24b   : > { %v2434_v9 = vpop.f32.mrb[8].mxu1  ;;  %v1299_v53 = vadd.f32 %v3232_v3, %v3173_v52  ;;  %v1284_v37 = vmax.f32 %v3232_v3, %v1283_v10  ;;  %2576 = vpow2.f32 %v1206_v18  ;;  %v3271_v50 = vpop.eup %2564  ;;  %v1268_v36 = vsub.f32 %v3223_v58, %v3232_v3 }
 0x24c   : > { %996 = vst.msk [vmem:[#allocation3 + $0x30] sm:$0xff] %vm554_vm1, %v2434_v9  ;;  %v975_v51 = vpop.f32.mrb[9].mxu1  ;;  %2578 = vpow2.f32 %v1236_v20  ;;  %v1255_v58 = vsub.f32 %v1250_v24, %v1251_v22 }
 0x24d   : > { %994 = vst.msk [vmem:[#allocation3 + $0x20] sm:$0xff] %vm554_vm1, %v975_v51  ;;  %v2435_v62 = vpop.f32.mrb[10].mxu1  ;;  %v1300_v2 = vmax.f32 %v1299_v53, %v3235_v0  ;;  %v1285_v28 = vsub.f32 %v3232_v3, %v1284_v37  ;;  %v1288_v42 = vsub.f32 %v1283_v10, %v1284_v37  ;;  %2580 = vrcp.f32 %v1119_v16  ;;  %v1144_v37 = vld [vmem:[#allocation3] sm:$0xff] }
 0x24e   : > { %997 = vst.msk [vmem:[#allocation3 + $0x38] sm:$0xff] %vm554_vm1, %v2435_v62  ;;  %v978_v26 = vpop.f32.mrb[11].mxu1  ;;  %2582 = vpow2.f32 %v2316_v34  ;;  %v1222_v51 = vsub.f32 %v3242_v57, %v1218_v11  ;;  %v3274_v59 = vpop.eup %2566  ;;  %v3291_v11 = vld [vmem:[#allocation2 + $0x30] sm:$0xff]  ;;  %v1269_v17 = vmul.f32 1.442695, %v1268_v36 }
 0x24f   : > { %995 = vst.msk [vmem:[#allocation3 + $0x28] sm:$0xff] %vm554_vm1, %v978_v26  ;;  %v1301_v30 = vsub.f32 %v1299_v53, %v1300_v2  ;;  %v1317_v19 = vmax.f32 %v1300_v2, %v1316_v32  ;;  %v1286_v9 = vmul.f32 1.442695, %v1285_v28  ;;  %v1304_v21 = vsub.f32 %v3235_v0, %v1300_v2 }
 0x250   : > { %v1332_v56 = vadd.f32 %v1300_v2, %v3173_v52  ;;  %v1289_v55 = vmul.f32 1.442695, %v1288_v42  ;;  %2584 = vpow2.f32 %v1152_v4  ;;  %v2569_v39 = vpop.eup %2568  ;;  %v1239_v26 = vmul.f32 1.442695, %v1238_v5 }
 0x251   : > { %v1302_v62 = vmul.f32 1.442695, %v1301_v30  ;;  %v1318_v63 = vsub.f32 %v1300_v2, %v1317_v19  ;;  %2586 = vpow2.f32 %v1171_v47  ;;  %v1271_v0 = vsub.f32 %v3227_v54, %v3232_v3 }
 0x252   : > { %2588 = vpow2.f32 %v1220_v49  ;;  %v3279_v1 = vpop.eup %2570  ;;  %v1305_v57 = vmul.f32 1.442695, %v1304_v21  ;;  %v3284_v29 = vmax.f32 %v1332_v56, %v3253_v46  ;;  %v1321_v7 = vsub.f32 %v1316_v32, %v1317_v19 }
 0x253   : > { %2590 = vpow2.f32 %v1286_v9  ;;  %v3286_v6 = vpop.eup %2572  ;;  %v1223_v8 = vmul.f32 1.442695, %v1222_v51  ;;  %v1319_v53 = vmul.f32 1.442695, %v1318_v63  ;;  %v1252_v54 = vsub.f32 %v3215_v13, %v1251_v22  ;;  %v1183_v63 = vld [vmem:[#allocation3 + $0x8] sm:$0xff] }
 0x254   : > { %2592 = vpow2.f32 %v1289_v55  ;;  %v2575_v10 = vpop.eup %2574  ;;  %v1272_v3 = vmul.f32 1.442695, %v1271_v0  ;;  %v3297_v15 = vadd.f32 %v3284_v29, %v3173_v52  ;;  %v1322_v13 = vmul.f32 1.442695, %v1321_v7 }
 0x255   : > { %2594 = vpow2.f32 %v1302_v62  ;;  %v3289_v61 = vpop.eup %2576  ;;  %v1334_v20 = vsub.f32 %v1332_v56, %v3284_v29  ;;  %v3304_v16 = vadd.f32 %v3291_v11, %v3195_v23  ;;  %v1253_v25 = vmul.f32 1.442695, %v1252_v54 }
 0x256   : > { %2596 = vpow2.f32 %v1239_v26  ;;  %v3293_v14 = vpop.eup %2578  ;;  %v1337_v52 = vsub.f32 %v3253_v46, %v3284_v29  ;;  %v1177_v32 = vmul.f32 %v3274_v59, %v1144_v37  ;;  %v1256_v34 = vmul.f32 1.442695, %v1255_v58 }
 0x257   : > { %2598 = vpow2.f32 %v1305_v57  ;;  %v3299_v18 = vpop.eup %2580  ;;  %v3310_v4 = vadd.f32 %v1379_v40, %v3195_v23  ;;  %v3314_v30 = vmax.f32 %v3297_v15, %v3291_v11  ;;  %v1335_v24 = vmul.f32 1.442695, %v1334_v20 }
 0x258   : > { %2600 = vpow2.f32 %v1223_v8  ;;  %v2583_v2 = vpop.eup %2582  ;;  %v2319_v49 = vmul.f32 -1.442695, %v3204_v33  ;;  %v1158_v9 = vmul.f32 %v2569_v39, %v1144_v37  ;;  %v1350_v21 = vmax.f32 %v3284_v29, %v3304_v16 }
 0x259   : > { %2602 = vpow2.f32 %v1319_v53  ;;  %v1338_v55 = vmul.f32 1.442695, %v1337_v52  ;;  %v3332_v33 = vmul.f32 %v3286_v6, %v1183_v63  ;;  %v1367_v26 = vsub.f32 %v3297_v15, %v3314_v30  ;;  %v3349_v15 = vld [vmem:[#allocation3 + $0x10] sm:$0xff] }
 0x25a   : > { %v2585_v28 = vpop.eup %2584  ;;  %2604 = vpow2.f32 %v1272_v3  ;;  %v3342_v8 = vadd.f32 1.0, %v2583_v2  ;;  %v1383_v54 = vmax.f32 %v3314_v30, %v3310_v4  ;;  %v1351_v58 = vsub.f32 %v3284_v29, %v1350_v21 }
 0x25b   : > { %v2587_v42 = vpop.eup %2586  ;;  %v3316_v19 = vmul.f32 0.0, %v2585_v28  ;;  %2606 = vpow2.f32 %v1269_v17  ;;  %v1354_v40 = vsub.f32 %v3304_v16, %v1350_v21  ;;  %v1368_v2 = vmul.f32 1.442695, %v1367_v26 }
 0x25c   : > { %v3318_v47 = vpop.eup %2588  ;;  %2608 = vpow2.f32 %v1322_v13  ;;  %v1176_v46 = vmul.f32 0.0, %v2587_v42  ;;  %v1352_v16 = vmul.f32 1.442695, %v1351_v58 }
 0x25d   : > { %v3321_v5 = vpop.eup %2590  ;;  %v1160_v23 = vadd.f32 %v2569_v39, %v3316_v19  ;;  %2610 = vpow2.f32 %v1253_v25  ;;  %v1209_v39 = vmul.f32 %v3289_v61, %v1183_v63 }
 0x25e   : > { %v3326_v56 = vpop.eup %2592  ;;  %v1178_v51 = vadd.f32 %v1177_v32, %v1176_v46  ;;  %v1179_v62 = vadd.f32 %v3274_v59, %v1176_v46  ;;  %2612 = vpow2.f32 %v1256_v34  ;;  %v1370_v59 = vsub.f32 %v3291_v11, %v3314_v30 }
 0x25f   : > { %v3329_v22 = vpop.eup %2594  ;;  %2614 = vrcp.f32 %v1160_v23  ;;  %v2320_v11 = vmul.f32 -1.442695, %v3217_v45  ;;  %v1355_v46 = vmul.f32 1.442695, %v1354_v40 }
 0x260   : > { %v2597_v0 = vpop.eup %2596  ;;  %2616 = vpow2.f32 %v1335_v24  ;;  %v1195_v36 = vmul.f32 %v3279_v1, %v1179_v62  ;;  %v1211_v57 = vmul.f32 %v2575_v10, %v1179_v62  ;;  %v1208_v53 = vmul.f32 %v2575_v10, %v1178_v51  ;;  %v3365_v24 = vld [vmem:[#allocation3 + $0x18] sm:$0xff] }
 0x261   : > { %v3340_v7 = vpop.eup %2598  ;;  %2618 = vpow2.f32 %v1338_v55  ;;  %v1242_v10 = vmul.f32 %v2597_v0, %v3349_v15  ;;  %v1192_v26 = vmul.f32 %v3279_v1, %v1178_v51 }
 0x262   : > { %v3347_v3 = vpop.eup %2600  ;;  %v1196_v37 = vadd.f32 %v3286_v6, %v1195_v36  ;;  %v1212_v17 = vadd.f32 %v3289_v61, %v1211_v57  ;;  %v1210_v20 = vadd.f32 %v1209_v39, %v1208_v53  ;;  %v1371_v6 = vmul.f32 1.442695, %v1370_v59 }
 0x263   : > { %v3355_v13 = vpop.eup %2602  ;;  %v1384_v61 = vsub.f32 %v3314_v30, %v1383_v54  ;;  %v1159_v30 = vadd.f32 %v1158_v9, %v3316_v19  ;;  %v2321_v9 = vmul.f32 -1.442695, %v3199_v27 }
 0x264   : > { %v2605_v29 = vpop.eup %2604  ;;  %2620 = vrcp.f32 %v1196_v37  ;;  %v1228_v25 = vmul.f32 %v3318_v47, %v1212_v17  ;;  %v1244_v28 = vmul.f32 %v3293_v14, %v1212_v17  ;;  %v1241_v45 = vmul.f32 %v3293_v14, %v1210_v20  ;;  %v1282_v37 = vld [vmem:[#allocation3 + $0x20] sm:$0xff] }
 0x265   : > { %v2607_v52 = vpop.eup %2606  ;;  %2622 = vpow2.f32 %v2319_v49  ;;  %v1275_v21 = vmul.f32 %v2605_v29, %v3365_v24  ;;  %v1387_v49 = vsub.f32 %v3310_v4, %v1383_v54  ;;  %v1385_v36 = vmul.f32 1.442695, %v1384_v61 }
 0x266   : > { %v3362_v32 = vpop.eup %2608  ;;  %v1229_v34 = vadd.f32 %v3347_v3, %v1228_v25  ;;  %v1245_v42 = vadd.f32 %v2597_v0, %v1244_v28  ;;  %2624 = vpow2.f32 %v2320_v11  ;;  %v1243_v55 = vadd.f32 %v1242_v10, %v1241_v45 }
 0x267   : > { %v2611_v23 = vpop.eup %2610  ;;  %2626 = vpow2.f32 %v1368_v2  ;;  %v1308_v54 = vmul.f32 %v3340_v7, %v1282_v37  ;;  %v1388_v19 = vmul.f32 1.442695, %v1387_v49  ;;  %v1194_v11 = vadd.f32 %v3332_v33, %v1192_v26 }
 0x268   : > { %v2613_v14 = vpop.eup %2612  ;;  %2628 = vrcp.f32 %v1229_v34  ;;  %v1277_v62 = vmul.f32 %v2607_v52, %v1245_v42  ;;  %v1261_v63 = vmul.f32 %v2611_v23, %v1245_v42  ;;  %v1274_v0 = vmul.f32 %v2607_v52, %v1243_v55 }
 0x269   : > { %v2615_v39 = vpop.eup %2614  ;;  %2630 = vpow2.f32 %v1352_v16  ;;  %v1225_v40 = vmul.f32 %v3318_v47, %v1210_v20  ;;  %v1315_v20 = vld [vmem:[#allocation3 + $0x28] sm:$0xff]  ;;  %v1258_v16 = vmul.f32 %v2611_v23, %v1243_v55 }
 0x26a   : > { %v2617_v57 = vpop.eup %2616  ;;  %v1162_v59 = vmul.f32 %v2615_v39, %v1159_v30  ;;  %v1262_v53 = vadd.f32 %v2613_v14, %v1261_v63  ;;  %2632 = vpow2.f32 %v1355_v46  ;;  %v1278_v58 = vadd.f32 %v2605_v29, %v1277_v62 }
 0x26b   : > { %2634 = vpow2.f32 %v1371_v6  ;;  %v1276_v4 = vadd.f32 %v1275_v21, %v1274_v0  ;;  %v2619_v17 = vpop.eup %2618  ;;  %v1121_v29 = vadd.f32 1.0, %v3263_v43  ;;  %v1226_v6 = vmul.f32 %v3347_v3, %v3349_v15 }
 0x26c   : > { %1163 = vst.msk [vmem:[#allocation2] sm:$0xff] %vm554_vm1, %v1162_v59  ;;  %2636 = vrcp.f32 %v1262_v53  ;;  %v1294_v1 = vmul.f32 %v3321_v5, %v1278_v58  ;;  %v1310_v51 = vmul.f32 %v3329_v22, %v1278_v58  ;;  %v1341_v34 = vmul.f32 %v2619_v17, %v1315_v20 }
 0x26d   : > { %v1307_v10 = vmul.f32 %v3329_v22, %v1276_v4  ;;  %2638 = vpow2.f32 %v1385_v36  ;;  %v2322_v22 = vmul.f32 -1.442695, %v3211_v41  ;;  %v1227_v61 = vadd.f32 %v1226_v6, %v1225_v40 }
 0x26e   : > { %v2621_v2 = vpop.eup %2620  ;;  %2640 = vrcp.f32 %v3342_v8  ;;  %v1295_v27 = vadd.f32 %v3326_v56, %v1294_v1  ;;  %v1311_v25 = vadd.f32 %v3340_v7, %v1310_v51  ;;  %v1122_v3 = vadd.f32 1.0, %v3271_v50 }
 0x26f   : > { %v2623_v28 = vpop.eup %2622  ;;  %v1198_v52 = vmul.f32 %v2621_v2, %v1194_v11  ;;  %v1309_v33 = vadd.f32 %v1308_v54, %v1307_v10  ;;  %2642 = vpow2.f32 %v1388_v19  ;;  %v1259_v21 = vmul.f32 %v2613_v14, %v3365_v24 }
 0x270   : > { %v2625_v47 = vpop.eup %2624  ;;  %2644 = vrcp.f32 %v1295_v27  ;;  %v1327_v43 = vmul.f32 %v3355_v13, %v1311_v25  ;;  %v1343_v45 = vmul.f32 %v2617_v57, %v1311_v25  ;;  %v1291_v62 = vmul.f32 %v3321_v5, %v1276_v4  ;;  %v1348_v5 = vld [vmem:[#allocation3 + $0x30] sm:$0xff] }
 0x271   : > { %v2627_v8 = vpop.eup %2626  ;;  %1199 = vst.msk [vmem:[#allocation2 + $0x8] sm:$0xff] %vm554_vm1, %v1198_v52  ;;  %v1340_v7 = vmul.f32 %v2617_v57, %v1309_v33  ;;  %2646 = vrcp.f32 %v1121_v29  ;;  %v1260_v39 = vadd.f32 %v1259_v21, %v1258_v16  ;;  %v1292_v0 = vmul.f32 %v3326_v56, %v1282_v37 }
 0x272   : > { %v2629_v42 = vpop.eup %2628  ;;  %v1328_v15 = vadd.f32 %v3362_v32, %v1327_v43  ;;  %v1344_v46 = vadd.f32 %v2619_v17, %v1343_v45  ;;  %2648 = vpow2.f32 %v2321_v9  ;;  %v1123_v59 = vadd.f32 1.0, %v2623_v28 }
 0x273   : > { %v2631_v41 = vpop.eup %2630  ;;  %v1231_v49 = vmul.f32 %v2629_v42, %v1227_v61  ;;  %v1342_v50 = vadd.f32 %v1341_v34, %v1340_v7  ;;  %v1398_v24 = vld [vmem:[#allocation2] sm:$0xff]  ;;  %v1293_v54 = vadd.f32 %v1292_v0, %v1291_v62  ;;  %v1324_v51 = vmul.f32 %v3355_v13, %v1309_v33 }
 0x274   : > { %v2633_v30 = vpop.eup %2632  ;;  %2650 = vrcp.f32 %v1328_v15  ;;  %v1360_v23 = vmul.f32 %v2631_v41, %v1344_v46  ;;  %v1376_v55 = vmul.f32 %v2627_v8, %v1344_v46  ;;  %v1406_v56 = vmul.f32 %v3299_v18, %v1398_v24 }
 0x275   : > { %v2635_v63 = vpop.eup %2634  ;;  %2652 = vpow2.f32 %v2322_v22  ;;  %1232 = vst.msk [vmem:[#allocation2 + $0x10] sm:$0xff] %vm554_vm1, %v1231_v49  ;;  %v1373_v17 = vmul.f32 %v2627_v8, %v1342_v50  ;;  %v1124_v40 = vadd.f32 1.0, %v2625_v47  ;;  %v1325_v29 = vmul.f32 %v3362_v32, %v1315_v20 }
 0x276   : > { %v2637_v26 = vpop.eup %2636  ;;  %2654 = vrcp.f32 %v1122_v3  ;;  %v1361_v36 = vadd.f32 %v2633_v30, %v1360_v23  ;;  %v1377_v57 = vadd.f32 %v2635_v63, %v1376_v55  ;;  %v1374_v4 = vmul.f32 %v2635_v63, %v1348_v5  ;;  %v1381_v3 = vld [vmem:[#allocation3 + $0x38] sm:$0xff] }
 0x277   : > { %v2639_v14 = vpop.eup %2638  ;;  %v1264_v53 = vmul.f32 %v2637_v26, %v1260_v39  ;;  %v1326_v6 = vadd.f32 %v1325_v29, %v1324_v51  ;;  %v1357_v52 = vmul.f32 %v2631_v41, %v1342_v50  ;;  %v1358_v22 = vmul.f32 %v2633_v30, %v1348_v5 }
 0x278   : > { %v2641_v58 = vpop.eup %2640  ;;  %2656 = vrcp.f32 %v1361_v36  ;;  %v1393_v19 = vmul.f32 %v2639_v14, %v1377_v57  ;;  %v1399_v9 = vld [vmem:[#allocation2 + $0x8] sm:$0xff]  ;;  %v1375_v13 = vadd.f32 %v1374_v4, %v1373_v17  ;;  %v2716_v4 = vld [vmem:[%s3674_s9] sm:$0xff] }
 0x279   : > { %v2643_v1 = vpop.eup %2642  ;;  %1265 = vst.msk [vmem:[#allocation2 + $0x18] sm:$0xff] %vm554_vm1, %v1264_v53  ;;  %v1407_v37 = vmul.f32 %v2641_v58, %v1399_v9  ;;  %v1359_v8 = vadd.f32 %v1358_v22, %v1357_v52  ;;  %v2718_v17 = vld [vmem:[%s3674_s9 + $0x8] sm:$0xff] }
 0x27a   : > { %v2645_v11 = vpop.eup %2644  ;;  %v1394_v10 = vadd.f32 %v2643_v1, %v1393_v19  ;;  %v1390_v61 = vmul.f32 %v2639_v14, %v1375_v13  ;;  %v1391_v15 = vmul.f32 %v2643_v1, %v1381_v3  ;;  %v2717_v1 = vld [vmem:[%s3674_s9 + $0x10] sm:$0xff] }
 0x27b   : > { %v1297_v2 = vmul.f32 %v2645_v11, %v1293_v54  ;;  %v1414_v27 = vpack.c.bf16 %v1407_v37, %v1406_v56  ;;  %v2647_v25 = vpop.eup %2646  ;;  %v2719_v11 = vld [vmem:[%s3674_s9 + $0x18] sm:$0xff] }
 0x27c   : > { %2658 = vrcp.f32 %v1394_v10  ;;  %v2649_v28 = vpop.eup %2648  ;;  %v1400_v33 = vld [vmem:[#allocation2 + $0x10] sm:$0xff]  ;;  %v1392_v21 = vadd.f32 %v1391_v15, %v1390_v61 }
 0x27d   : > { %2660 = vrcp.f32 %v1123_v59  ;;  %1298 = vst.msk [vmem:[#allocation2 + $0x20] sm:$0xff] %vm554_vm1, %v1297_v2  ;;  %2452 = vmatprep.mubr.msk.bf16.mxu1 %vm554_vm1, %v1414_v27  ;;  %v1125_v32 = vadd.f32 1.0, %v2649_v28  ;;  %v1408_v16 = vmul.f32 %v2647_v25, %v1400_v33  ;;  %v2720_v28 = vld [vmem:[%s3674_s9 + $0x20] sm:$0xff] }
 0x27e   : > { %v2651_v18 = vpop.eup %2650  ;;  %2662 = vrcp.f32 %v1124_v40 }
 0x27f   : > { %v2653_v47 = vpop.eup %2652  ;;  %v1330_v43 = vmul.f32 %v2651_v18, %v1326_v6  ;;  %2664 = vrcp.f32 %v1125_v32  ;;  %v2721_v18 = vld [vmem:[%s3674_s9 + $0x30] sm:$0xff] }
 0x280   : > { %v2655_v45 = vpop.eup %2654  ;;  %v1401_v20 = vld [vmem:[#allocation2 + $0x18] sm:$0xff]  ;;  %v1126_v42 = vadd.f32 1.0, %v2653_v47  ;;  %v2722_v47 = vld [vmem:[%s3674_s9 + $0x28] sm:$0xff] }
 0x281   : > { %1331 = vst.msk [vmem:[#allocation2 + $0x28] sm:$0xff] %vm554_vm1, %v1330_v43  ;;  %v1409_v7 = vmul.f32 %v2655_v45, %v1401_v20  ;;  %v2723_v45 = vld [vmem:[%s3674_s9 + $0x38] sm:$0xff] }
 0x282   : > { %v2657_v34 = vpop.eup %2656  ;;  %2666 = vrcp.f32 %v1126_v42 }
 0x283   : > { %v1363_v46 = vmul.f32 %v2657_v34, %v1359_v8  ;;  %v1415_v41 = vpack.c.bf16 %v1409_v7, %v1408_v16 }
 0x284   : > { %v1402_v30 = vld [vmem:[#allocation2 + $0x20] sm:$0xff] }
 0x285   : > { %1364 = vst.msk [vmem:[#allocation2 + $0x30] sm:$0xff] %vm554_vm1, %v1363_v46  ;;  %2453 = vmatmul.mubr.msk.bf16.vlgmr.msra.gmra.mrb[12].mxu1 %vm554_vm1, %v1415_v41 }
 0x286   : > { %v2659_v49 = vpop.eup %2658 }
 0x287   : > { %v2661_v62 = vpop.eup %2660  ;;  %v1396_v23 = vmul.f32 %v2659_v49, %v1392_v21 }
 0x288   : > { %v2663_v55 = vpop.eup %2662  ;;  %v1403_v63 = vld [vmem:[#allocation2 + $0x28] sm:$0xff]  ;;  %v1410_v39 = vmul.f32 %v2661_v62, %v1402_v30 }
 0x289   : > { %1397 = vst.msk [vmem:[#allocation2 + $0x38] sm:$0xff] %vm554_vm1, %v1396_v23  ;;  %v1411_v50 = vmul.f32 %v2663_v55, %v1403_v63  ;;  %v2665_v36 = vpop.eup %2664 }
 0x28b   : > { %v1416_v26 = vpack.c.bf16 %v1411_v50, %v1410_v39 }
 0x28c   : > { %v1404_v0 = vld [vmem:[#allocation2 + $0x30] sm:$0xff]  ;;  %v2667_v57 = vpop.eup %2666 }
 0x28d   : > { %2456 = vmatprep.mubr.msk.bf16.mxu1 %vm554_vm1, %v1416_v26  ;;  %v1412_v14 = vmul.f32 %v2665_v36, %v1404_v0 }
 0x290   : > { %v1405_v24 = vld [vmem:[#allocation2 + $0x38] sm:$0xff] }
 0x291   : > { %v1413_v59 = vmul.f32 %v2667_v57, %v1405_v24 }
 0x293   : > { %v1417_v53 = vpack.c.bf16 %v1413_v59, %v1412_v14 }
 0x295   : > { %2457 = vmatmul.mubr.msk.bf16.gmra.mrb[16].mxu1 %vm554_vm1, %v1417_v53 }
 0x358   : > { %v2454_v5 = vpop.f32.mrb[12].mxu1 }
 0x359   : > { %v1480_v58 = vpop.f32.mrb[13].mxu1  ;;  %v3414_v51 = vadd.f32 %v2717_v1, %v2454_v5 }
 0x35a   : > { %v3409_v54 = vadd.f32 %v2716_v4, %v1480_v58  ;;  %v2455_v19 = vpop.f32.mrb[14].mxu1 }
 0x35b   : > { %v1483_v9 = vpop.f32.mrb[15].mxu1  ;;  %v3426_v40 = vadd.f32 %v2719_v11, %v2455_v19  ;;  %v1525_v2 = vsel %vm554_vm1, %v3414_v51, 0.0 }
 0x35c   : > { %v3419_v56 = vadd.f32 %v2718_v17, %v1483_v9  ;;  %v1519_v37 = vsel %vm554_vm1, %v3409_v54, 0.0 }
 0x35d   : > { %1520 = vadd.xlane.f32.xlu0 %v1519_v37  ;;  %v1528_v29 = vsel %vm554_vm1, %v3426_v40, 0.0 }
 0x35e   : > { %v1522_v10 = vsel %vm554_vm1, %v3419_v56, 0.0 }
 0x35f   : > { %1523 = vadd.xlane.f32.xlu1 %v1522_v10 }
 0x361   : > { %1526 = vadd.xlane.f32.xlu0 %v1525_v2 }
 0x363   : > { %1529 = vadd.xlane.f32.xlu1 %v1528_v29 }
 0x368   : > { %v2458_v27 = vpop.f32.mrb[16].mxu1 }
 0x369   : > { %v1496_v25 = vpop.f32.mrb[17].mxu1  ;;  %v3442_v33 = vadd.f32 %v2721_v18, %v2458_v27  ;;  %v2538_v18 = vld [vmem:[%s2846_s19 + $0x8] sm:$0xff]  }
 0x36a   : > { %v3437_v6 = vadd.f32 %v2720_v28, %v1496_v25  ;;  %v2459_v52 = vpop.f32.mrb[18].mxu1 }
 0x36b   : > { %v1499_v13 = vpop.f32.mrb[19].mxu1  ;;  %v3454_v32 = vadd.f32 %v2723_v45, %v2459_v52  ;;  %v1537_v8 = vsel %vm554_vm1, %v3442_v33, 0.0  ;;  %v2536_v52 = vld [vmem:[%s2846_s19] sm:$0xff]  }
 0x36c   : > { %v3447_v22 = vadd.f32 %v2722_v47, %v1499_v13  ;;  %v1531_v43 = vsel %vm554_vm1, %v3437_v6, 0.0  ;;  %v2537_v13 = vld [vmem:[%s2856_s25] sm:$0xff]   ;;  %2460 = vmatprep.subr.bf16.mxu0 %v2536_v52  ;;  %v2539_v47 = vld [vmem:[%s2856_s25 + $0x8] sm:$0xff]  }
 0x36d   : > { %1532 = vadd.xlane.f32.xlu0 %v1531_v43  ;;  %v1540_v61 = vsel %vm554_vm1, %v3454_v32, 0.0  ;;  %2472 = vmatprep.subr.bf16.mxu1 %v2537_v13  ;;  %v3515_v43 = vld [vmem:[%s2851_s22] sm:$0xff]  }
 0x36e   : > { %v1534_v20 = vsel %vm554_vm1, %v3447_v22, 0.0  ;;  %2461 = vmatpush3.bf16.msra.mxu0 %v2536_v52  ;;  %2473 = vmatpush3.bf16.msra.mxu1 %v2537_v13 }
 0x36f   : > { %1535 = vadd.xlane.f32.xlu1 %v1534_v20  ;;  %2462 = vmatprep.subr.bf16.mxu0 %v2538_v18 }
 0x370   : > { %2474 = vmatprep.subr.bf16.mxu1 %v2539_v47 }
 0x371   : > { %1538 = vadd.xlane.f32.xlu0 %v1537_v8 }
 0x372   : > { %2463 = vmatpush3.bf16.msra.mxu0 %v2538_v18  ;;  %2475 = vmatpush3.bf16.msra.mxu1 %v2539_v47 }
 0x373   : > { %1541 = vadd.xlane.f32.xlu1 %v1540_v61  ;;  %2484 = vmatprep.subr.bf16.mxu0 %v3515_v43 }
 0x3ea   : > { %v1521_v16 = vpop.xlane.xlu0 %1520 }
 0x3eb   : > { %v1543_v7 = vmul.f32 0.03125, %v1521_v16 }
 0x3ec   : > { %v1524_v34 = vpop.xlane.xlu1 %1523 }
 0x3ed   : > { %v3463_v42 = vsub.f32 %v3409_v54, %v1543_v7  ;;  %v1544_v3 = vmul.f32 0.03125, %v1524_v34 }
 0x3ee   : > { %v1527_v15 = vpop.xlane.xlu0 %1526 }
 0x3ef   : > { %v3466_v46 = vsub.f32 %v3419_v56, %v1544_v3  ;;  %v1545_v41 = vmul.f32 0.03125, %v1527_v15  ;;  %v1559_v21 = vmul.f32 %v3463_v42, %v3463_v42 }
 0x3f0   : > { %v1530_v49 = vpop.xlane.xlu1 %1529 }
 0x3f1   : > { %v3471_v30 = vsub.f32 %v3414_v51, %v1545_v41  ;;  %v1546_v62 = vmul.f32 0.03125, %v1530_v49  ;;  %v1567_v23 = vsel %vm554_vm1, %v1559_v21, 0.0  ;;  %v1560_v55 = vmul.f32 %v3466_v46, %v3466_v46 }
 0x3f2   : > { %1568 = vadd.xlane.f32.xlu0 %v1567_v23 }
 0x3f3   : > { %v3477_v63 = vsub.f32 %v3426_v40, %v1546_v62  ;;  %v1570_v39 = vsel %vm554_vm1, %v1560_v55, 0.0  ;;  %v1561_v50 = vmul.f32 %v3471_v30, %v3471_v30  ;;  %v2724_v62 = vld [vmem:[%s2821_s18] sm:$0xff] }
 0x3f4   : > { %1571 = vadd.xlane.f32.xlu1 %v1570_v39  ;;  %v3521_v23 = vrot.slane %v2724_v62, %v1166_v60  ;;  %v2725_v39 = vld [vmem:[%s2821_s18 + $0x8] sm:$0xff] }
 0x3f5   : > { %v1573_v26 = vsel %vm554_vm1, %v1561_v50, 0.0  ;;  %v1562_v0 = vmul.f32 %v3477_v63, %v3477_v63  ;;  %v3526_v50 = vrot.slane %v2725_v39, %v706_v31  ;;  %v3539_v60 = vrot.slane %v2725_v39, %v694_v35 }
 0x3f6   : > { %1574 = vadd.xlane.f32.xlu0 %v1573_v26  ;;  %v3530_v26 = vrot.slane %v2724_v62, %v1147_v48 }
 0x3f7   : > { %v1576_v36 = vsel %vm554_vm1, %v1562_v0, 0.0 }
 0x3f8   : > { %1577 = vadd.xlane.f32.xlu1 %v1576_v36 }
 0x3fa   : > { %v1533_v57 = vpop.xlane.xlu0 %1532 }
 0x3fb   : > { %v1547_v24 = vmul.f32 0.03125, %v1533_v57 }
 0x3fc   : > { %v1536_v14 = vpop.xlane.xlu1 %1535 }
 0x3fd   : > { %v3487_v59 = vsub.f32 %v3437_v6, %v1547_v24  ;;  %v1548_v53 = vmul.f32 0.03125, %v1536_v14  ;;  %v3535_v14 = vrot.slane %v2725_v39, %v738_v38 }
 0x3fe   : > { %v1539_v5 = vpop.xlane.xlu0 %1538 }
 0x3ff   : > { %v3490_v58 = vsub.f32 %v3447_v22, %v1548_v53  ;;  %v1549_v4 = vmul.f32 0.03125, %v1539_v5  ;;  %v1563_v19 = vmul.f32 %v3487_v59, %v3487_v59 }
 0x400   : > { %v1542_v9 = vpop.xlane.xlu1 %1541 }
 0x401   : > { %v3495_v1 = vsub.f32 %v3442_v33, %v1549_v4  ;;  %v1550_v17 = vmul.f32 0.03125, %v1542_v9  ;;  %v1579_v37 = vsel %vm554_vm1, %v1563_v19, 0.0  ;;  %v1564_v11 = vmul.f32 %v3490_v58, %v3490_v58 }
 0x402   : > { %1580 = vadd.xlane.f32.xlu0 %v1579_v37  ;;  %v1671_v37 = vmul.f32 0.0, %v3526_v50 }
 0x403   : > { %v3501_v10 = vsub.f32 %v3454_v32, %v1550_v17  ;;  %v1582_v2 = vsel %vm554_vm1, %v1564_v11, 0.0  ;;  %v1565_v29 = vmul.f32 %v3495_v1, %v3495_v1 }
 0x404   : > { %1583 = vadd.xlane.f32.xlu1 %v1582_v2 }
 0x405   : > { %v1585_v27 = vsel %vm554_vm1, %v1565_v29, 0.0  ;;  %v1566_v25 = vmul.f32 %v3501_v10, %v3501_v10  ;;  %v1703_v29 = vmul.f32 0.0, %v3535_v14 }
 0x406   : > { %1586 = vadd.xlane.f32.xlu0 %v1585_v27 }
 0x407   : > { %v1588_v28 = vsel %vm554_vm1, %v1566_v25, 0.0 }
 0x408   : > { %1589 = vadd.xlane.f32.xlu1 %v1588_v28 }
 0x47f   : > { %v1569_v45 = vpop.xlane.xlu0 %1568 }
 0x480   : > { %v1591_v20 = vmul.f32 0.03125, %v1569_v45 }
 0x481   : > { %v1572_v8 = vpop.xlane.xlu1 %1571 }
 0x482   : > { %v1599_v61 = vadd.f32 1e-05, %v1591_v20  ;;  %v1592_v16 = vmul.f32 0.03125, %v1572_v8 }
 0x483   : > { %v1575_v7 = vpop.xlane.xlu0 %1574 }
 0x484   : > { %2668 = vrsqrt.f32 %v1599_v61  ;;  %v1600_v34 = vadd.f32 1e-05, %v1592_v16  ;;  %v1593_v3 = vmul.f32 0.03125, %v1575_v7 }
 0x485   : > { %v1578_v15 = vpop.xlane.xlu1 %1577 }
 0x486   : > { %2670 = vrsqrt.f32 %v1600_v34  ;;  %v1601_v41 = vadd.f32 1e-05, %v1593_v3  ;;  %v1594_v21 = vmul.f32 0.03125, %v1578_v15 }
 0x488   : > { %2672 = vrsqrt.f32 %v1601_v41  ;;  %v1602_v49 = vadd.f32 1e-05, %v1594_v21 }
 0x48a   : > { %2674 = vrsqrt.f32 %v1602_v49 }
 0x48e   : > { %v2669_v55 = vpop.eup %2668 }
 0x48f   : > { %v1615_v0 = vmul.f32 %v2669_v55, %v3463_v42  ;;  %v1581_v36 = vpop.xlane.xlu0 %1580  ;;  %v3545_v42 = vrot.slane %v2725_v39, %v726_v44 }
 0x490   : > { %v2671_v57 = vpop.eup %2670  ;;  %v1595_v24 = vmul.f32 0.03125, %v1581_v36 }
 0x491   : > { %v1627_v31 = vmul.f32 %v3521_v23, %v1615_v0  ;;  %v1616_v53 = vmul.f32 %v2671_v57, %v3466_v46  ;;  %v1584_v5 = vpop.xlane.xlu1 %1583 }
 0x492   : > { %v2673_v48 = vpop.eup %2672  ;;  %v1603_v4 = vadd.f32 1e-05, %v1595_v24  ;;  %v1596_v19 = vmul.f32 0.03125, %v1584_v5 }
 0x493   : > { %v1639_v9 = vadd.f32 %v3530_v26, %v1627_v31  ;;  %v1628_v38 = vmul.f32 %v3521_v23, %v1616_v53  ;;  %v1617_v17 = vmul.f32 %v2673_v48, %v3471_v30  ;;  %v1587_v35 = vpop.xlane.xlu0 %1586 }
 0x494   : > { %v2675_v11 = vpop.eup %2674  ;;  %2676 = vrsqrt.f32 %v1603_v4  ;;  %v1604_v46 = vadd.f32 1e-05, %v1596_v19  ;;  %v1597_v2 = vmul.f32 0.03125, %v1587_v35 }
 0x495   : > { %v1640_v27 = vadd.f32 %v3530_v26, %v1628_v38  ;;  %v1629_v12 = vmul.f32 %v3521_v23, %v1617_v17  ;;  %v1618_v44 = vmul.f32 %v2675_v11, %v3477_v63  ;;  %v1590_v25 = vpop.xlane.xlu1 %1589  ;;  %v1659_v28 = vmul.f32 %v3539_v60, %v1639_v9  ;;  %v2541_v38 = vld [vmem:[%s2851_s22 + $0x8] sm:$0xff]  }
 0x496   : > { %2678 = vrsqrt.f32 %v1604_v46  ;;  %v1605_v30 = vadd.f32 1e-05, %v1597_v2  ;;  %v1598_v52 = vmul.f32 0.03125, %v1590_v25  ;;  %v1672_v13 = vmul.f32 %v3526_v50, %v1639_v9 }
 0x497   : > { %v1641_v18 = vadd.f32 %v3530_v26, %v1629_v12  ;;  %v1630_v47 = vmul.f32 %v3521_v23, %v1618_v44  ;;  %v1660_v45 = vmul.f32 %v3539_v60, %v1640_v27  ;;  %v1679_v20 = vadd.f32 %v1671_v37, %v1659_v28 }
 0x498   : > { %2680 = vrsqrt.f32 %v1605_v30  ;;  %v1606_v8 = vadd.f32 1e-05, %v1598_v52  ;;  %v1691_v61 = vmul.f32 %v3545_v42, %v1639_v9  ;;  %v1692_v63 = vmul.f32 %v3545_v42, %v1640_v27 }
 0x499   : > { %v1642_v16 = vadd.f32 %v3530_v26, %v1630_v47  ;;  %v1680_v7 = vadd.f32 %v1672_v13, %v1660_v45  ;;  %v1704_v34 = vmul.f32 %v3535_v14, %v1639_v9  ;;  %v1661_v3 = vmul.f32 %v3539_v60, %v1641_v18 }
 0x49a   : > { %2682 = vrsqrt.f32 %v1606_v8  ;;  %v1711_v15 = vadd.f32 %v1703_v29, %v1691_v61  ;;  %v1673_v41 = vmul.f32 %v3526_v50, %v1640_v27  ;;  %v1674_v21 = vmul.f32 %v3526_v50, %v1641_v18 }
 0x49b   : > { %v1719_v49 = vpack.c.bf16 %v1680_v7, %v1679_v20  ;;  %v1712_v62 = vadd.f32 %v1704_v34, %v1692_v63  ;;  %v1662_v55 = vmul.f32 %v3539_v60, %v1642_v16  ;;  %v1693_v39 = vmul.f32 %v3545_v42, %v1641_v18 }
 0x49c   : > { %v1681_v0 = vadd.f32 %v1673_v41, %v1661_v3  ;;  %v1694_v36 = vmul.f32 %v3545_v42, %v1642_v16  ;;  %v1705_v57 = vmul.f32 %v3535_v14, %v1640_v27  ;;  %v1706_v24 = vmul.f32 %v3535_v14, %v1641_v18 }
 0x49d   : > { %2464 = vmatprep.mubr.msk.bf16.mxu0 %vm554_vm1, %v1719_v49  ;;  %v1832_v31 = vpack.c.bf16 %v1712_v62, %v1711_v15  ;;  %v1682_v53 = vadd.f32 %v1674_v21, %v1662_v55  ;;  %v1675_v12 = vmul.f32 %v3526_v50, %v1642_v16  ;;  %v1707_v52 = vmul.f32 %v3535_v14, %v1642_v16 }
 0x49e   : > { %v2677_v5 = vpop.eup %2676  ;;  %v1713_v48 = vadd.f32 %v1705_v57, %v1693_v39  ;;  %v1714_v4 = vadd.f32 %v1706_v24, %v1694_v36 }
 0x49f   : > { %v1619_v19 = vmul.f32 %v2677_v5, %v3487_v59  ;;  %2476 = vmatprep.mubr.msk.bf16.mxu1 %vm554_vm1, %v1832_v31  ;;  %v1720_v9 = vpack.c.bf16 %v1682_v53, %v1681_v0 }
 0x4a0   : > { %v2679_v17 = vpop.eup %2678  ;;  %v1833_v35 = vpack.c.bf16 %v1714_v4, %v1713_v48 }
 0x4a1   : > { %v1631_v37 = vmul.f32 %v3521_v23, %v1619_v19  ;;  %v1620_v11 = vmul.f32 %v2679_v17, %v3490_v58  ;;  %2465 = vmatmul.mubr.msk.bf16.vlgmr.msra.gmra.mrb[12].mxu0 %vm554_vm1, %v1720_v9 }
 0x4a2   : > { %v2681_v46 = vpop.eup %2680  ;;  %2477 = vmatmul.mubr.msk.bf16.vlgmr.msra.gmra.mrb[20].mxu1 %vm554_vm1, %v1833_v35  ;;  %2485 = vmatpush3.bf16.msra.mxu0 %v3515_v43 }
 0x4a3   : > { %v1643_v2 = vadd.f32 %v3530_v26, %v1631_v37  ;;  %v1632_v59 = vmul.f32 %v3521_v23, %v1620_v11  ;;  %v1621_v29 = vmul.f32 %v2681_v46, %v3495_v1  ;;  %2486 = vmatprep.subr.bf16.mxu0 %v2541_v38 }
 0x4a4   : > { %v2683_v27 = vpop.eup %2682 }
 0x4a5   : > { %v1644_v44 = vadd.f32 %v3530_v26, %v1632_v59  ;;  %v1633_v58 = vmul.f32 %v3521_v23, %v1621_v29  ;;  %v1622_v25 = vmul.f32 %v2683_v27, %v3501_v10  ;;  %v1663_v28 = vmul.f32 %v3539_v60, %v1643_v2 }
 0x4a6   : > { %v1676_v43 = vmul.f32 %v3526_v50, %v1643_v2  ;;  %v1695_v30 = vmul.f32 %v3545_v42, %v1643_v2  ;;  %2487 = vmatpush3.bf16.msra.mxu0 %v2541_v38  ;;  %v1708_v10 = vmul.f32 %v3535_v14, %v1643_v2 }
 0x4a7   : > { %v1645_v1 = vadd.f32 %v3530_v26, %v1633_v58  ;;  %v1634_v13 = vmul.f32 %v3521_v23, %v1622_v25  ;;  %v1664_v18 = vmul.f32 %v3539_v60, %v1644_v44  ;;  %v1683_v47 = vadd.f32 %v1675_v12, %v1663_v28 }
 0x4a8   : > { %v1696_v45 = vmul.f32 %v3545_v42, %v1644_v44  ;;  %v1715_v20 = vadd.f32 %v1707_v52, %v1695_v30  ;;  %v1677_v8 = vmul.f32 %v3526_v50, %v1644_v44  ;;  %v1709_v7 = vmul.f32 %v3535_v14, %v1644_v44 }
 0x4a9   : > { %v1684_v61 = vadd.f32 %v1676_v43, %v1664_v18  ;;  %v1646_v63 = vadd.f32 %v3530_v26, %v1634_v13  ;;  %v1665_v16 = vmul.f32 %v3539_v60, %v1645_v1  ;;  %v1678_v23 = vmul.f32 %v3526_v50, %v1645_v1 }
 0x4aa   : > { %v1716_v34 = vadd.f32 %v1708_v10, %v1696_v45  ;;  %v1697_v3 = vmul.f32 %v3545_v42, %v1645_v1  ;;  %v1710_v15 = vmul.f32 %v3535_v14, %v1645_v1  ;;  %v2542_v14 = vld [vmem:[%s2851_s22 + $0x10] sm:$0xff]  }
 0x4ab   : > { %v1721_v41 = vpack.c.bf16 %v1684_v61, %v1683_v47  ;;  %v1666_v21 = vmul.f32 %v3539_v60, %v1646_v63  ;;  %v1685_v49 = vadd.f32 %v1677_v8, %v1665_v16  ;;  %v1698_v62 = vmul.f32 %v3545_v42, %v1646_v63  ;;  %2488 = vmatprep.subr.bf16.mxu0 %v2542_v14  ;;  %v2543_v60 = vld [vmem:[%s2851_s22 + $0x18] sm:$0xff]  }
 0x4ac   : > { %v1834_v26 = vpack.c.bf16 %v1716_v34, %v1715_v20  ;;  %v1717_v39 = vadd.f32 %v1709_v7, %v1697_v3  ;;  %2489 = vmatpush3.bf16.msra.mxu0 %v2542_v14 }
 0x4ad   : > { %2468 = vmatprep.mubr.msk.bf16.mxu0 %vm554_vm1, %v1721_v41  ;;  %v1686_v55 = vadd.f32 %v1678_v23, %v1666_v21  ;;  %v1718_v0 = vadd.f32 %v1710_v15, %v1698_v62  ;;  %2490 = vmatprep.subr.bf16.mxu0 %v2543_v60 }
 0x4ae   : > { %2480 = vmatprep.mubr.msk.bf16.mxu1 %vm554_vm1, %v1834_v26 }
 0x4af   : > { %v1722_v50 = vpack.c.bf16 %v1686_v55, %v1685_v49  ;;  %v1835_v36 = vpack.c.bf16 %v1718_v0, %v1717_v39 }
 0x4b0   : > { %2491 = vmatpush3.bf16.msra.mxu0 %v2543_v60 }
 0x4b1   : > { %2469 = vmatmul.mubr.msk.bf16.gmra.mrb[16].mxu0 %vm554_vm1, %v1722_v50  ;;  %2481 = vmatmul.mubr.msk.bf16.gmra.mrb[24].mxu1 %vm554_vm1, %v1835_v36 }
 0x574   : > { %v2466_v42 = vpop.f32.mrb[12].mxu0 }
 0x575   : > { %v1818_v57 = vmax.f32 %v2466_v42, 0.0  ;;  %v2478_v24 = vpop.f32.mrb[20].mxu1  ;;  %v1785_v31 = vpop.f32.mrb[13].mxu0 }
 0x576   : > { %v1816_v53 = vmax.f32 %v1785_v31, 0.0  ;;  %v1898_v5 = vpop.f32.mrb[21].mxu1  ;;  %v2467_v48 = vpop.f32.mrb[14].mxu0  ;;  %v2343_v61 = vmul.f32 -1.442695, %v2478_v24 }
 0x577   : > { %v1819_v4 = vmax.f32 %v2467_v48, 0.0  ;;  %v2479_v19 = vpop.f32.mrb[22].mxu1  ;;  %v1788_v9 = vpop.f32.mrb[15].mxu0  ;;  %v1826_v35 = vmul.f32 %v1818_v57, %v1818_v57  ;;  %v2341_v63 = vmul.f32 -1.442695, %v1898_v5 }
 0x578   : > { %v1817_v38 = vmax.f32 %v1788_v9, 0.0  ;;  %v1901_v17 = vpop.f32.mrb[23].mxu1  ;;  %v1824_v11 = vmul.f32 %v1816_v53, %v1816_v53  ;;  %v2344_v16 = vmul.f32 -1.442695, %v2479_v19  ;;  %2684 = vpow2.f32 %v2343_v61 }
 0x579   : > { %v1827_v37 = vmul.f32 %v1819_v4, %v1819_v4  ;;  %2686 = vpow2.f32 %v2341_v63  ;;  %v2342_v7 = vmul.f32 -1.442695, %v1901_v17 }
 0x57a   : > { %v1825_v46 = vmul.f32 %v1817_v38, %v1817_v38  ;;  %2688 = vpow2.f32 %v2344_v16 }
 0x57b   : > { %v1978_v2 = vpack.c.bf16 %v1827_v37, %v1826_v35  ;;  %2690 = vpow2.f32 %v2342_v7 }
 0x57c   : > { %v1977_v59 = vpack.c.bf16 %v1825_v46, %v1824_v11 }
 0x57e   : > { %2492 = vmatprep.mubr.msk.bf16.mxu0 %vm2013_vm2, %v1977_v59 }
 0x57f   : > { %2493 = vmatmul.mubr.msk.bf16.vlgmr.msra.gmra.mrb[20].mxu0 %vm2013_vm2, %v1978_v2 }
 0x582   : > { %v2685_v34 = vpop.eup %2684 }
 0x583   : > { %v2687_v23 = vpop.eup %2686  ;;  %v1955_v15 = vadd.f32 1.0, %v2685_v34 }
 0x584   : > { %v2470_v29 = vpop.f32.mrb[16].mxu0  ;;  %v2482_v27 = vpop.f32.mrb[24].mxu1  ;;  %v1953_v41 = vadd.f32 1.0, %v2687_v23 }
 0x585   : > { %v1822_v12 = vmax.f32 %v2470_v29, 0.0  ;;  %v1801_v44 = vpop.f32.mrb[17].mxu0  ;;  %v1914_v58 = vpop.f32.mrb[25].mxu1  ;;  %v2347_v49 = vmul.f32 -1.442695, %v2482_v27  ;;  %2692 = vrcp.f32 %v1955_v15 }
 0x586   : > { %v1820_v25 = vmax.f32 %v1801_v44, 0.0  ;;  %v2471_v28 = vpop.f32.mrb[18].mxu0  ;;  %v2483_v43 = vpop.f32.mrb[26].mxu1  ;;  %v2345_v26 = vmul.f32 -1.442695, %v1914_v58  ;;  %2694 = vrcp.f32 %v1953_v41 }
 0x587   : > { %v1823_v30 = vmax.f32 %v2471_v28, 0.0  ;;  %v1804_v52 = vpop.f32.mrb[19].mxu0  ;;  %v1917_v1 = vpop.f32.mrb[27].mxu1  ;;  %v1830_v18 = vmul.f32 %v1822_v12, %v1822_v12  ;;  %v2348_v55 = vmul.f32 -1.442695, %v2483_v43 }
 0x588   : > { %v1821_v13 = vmax.f32 %v1804_v52, 0.0  ;;  %v1828_v45 = vmul.f32 %v1820_v25, %v1820_v25  ;;  %v2689_v3 = vpop.eup %2688  ;;  %v2346_v39 = vmul.f32 -1.442695, %v1917_v1 }
 0x589   : > { %v1831_v47 = vmul.f32 %v1823_v30, %v1823_v30  ;;  %v1956_v21 = vadd.f32 1.0, %v2689_v3  ;;  %v2691_v62 = vpop.eup %2690 }
 0x58a   : > { %v1829_v10 = vmul.f32 %v1821_v13, %v1821_v13  ;;  %v1954_v0 = vadd.f32 1.0, %v2691_v62 }
 0x58b   : > { %v1980_v20 = vpack.c.bf16 %v1831_v47, %v1830_v18  ;;  %2696 = vrcp.f32 %v1956_v21 }
 0x58c   : > { %v1979_v8 = vpack.c.bf16 %v1829_v10, %v1828_v45  ;;  %2698 = vpow2.f32 %v2347_v49 }
 0x58d   : > { %2700 = vpow2.f32 %v2345_v26 }
 0x58e   : > { %2496 = vmatprep.mubr.msk.bf16.mxu0 %vm2013_vm2, %v1979_v8  ;;  %2702 = vpow2.f32 %v2348_v55 }
 0x58f   : > { %2497 = vmatmul.mubr.msk.bf16.gmra.mrb[24].mxu0 %vm2013_vm2, %v1980_v20  ;;  %2704 = vpow2.f32 %v2346_v39  ;;  %v2693_v50 = vpop.eup %2692 }
 0x590   : > { %2706 = vrcp.f32 %v1954_v0  ;;  %v2695_v36 = vpop.eup %2694 }
 0x595   : > { %v2697_v14 = vpop.eup %2696 }
 0x596   : > { %v2699_v60 = vpop.eup %2698 }
 0x597   : > { %v2701_v42 = vpop.eup %2700  ;;  %v1959_v48 = vadd.f32 1.0, %v2699_v60 }
 0x598   : > { %v2703_v24 = vpop.eup %2702  ;;  %v1957_v38 = vadd.f32 1.0, %v2701_v42 }
 0x599   : > { %v2705_v5 = vpop.eup %2704  ;;  %v1960_v11 = vadd.f32 1.0, %v2703_v24  ;;  %2708 = vrcp.f32 %v1959_v48 }
 0x59a   : > { %v2707_v9 = vpop.eup %2706  ;;  %v1958_v59 = vadd.f32 1.0, %v2705_v5  ;;  %2710 = vrcp.f32 %v1957_v38 }
 0x59b   : > { %2712 = vrcp.f32 %v1960_v11 }
 0x59c   : > { %2714 = vrcp.f32 %v1958_v59 }
 0x652   : > { %v2494_v57 = vpop.f32.mrb[20].mxu0 }
 0x653   : > { %v2093_v31 = vmul.f32 %v2693_v50, %v2494_v57  ;;  %v2060_v53 = vpop.f32.mrb[21].mxu0 }
 0x654   : > { %v2091_v4 = vmul.f32 %v2695_v36, %v2060_v53  ;;  %v2495_v19 = vpop.f32.mrb[22].mxu0 }
 0x655   : > { %v2101_v17 = vadd.f32 %v2093_v31, %v3414_v51  ;;  %v2094_v35 = vmul.f32 %v2697_v14, %v2495_v19  ;;  %v2063_v37 = vpop.f32.mrb[23].mxu0 }
 0x656   : > { %v2099_v46 = vadd.f32 %v2091_v4, %v3409_v54  ;;  %v2092_v2 = vmul.f32 %v2707_v9, %v2063_v37  ;;  %v2709_v54 = vpop.eup %2708 }
 0x657   : > { %2109 = vst.msk [vmem:[%s3674_s9 + $0x10] sm:$0xff] %vm554_vm1, %v2101_v17  ;;  %v2102_v29 = vadd.f32 %v2094_v35, %v3426_v40  ;;  %v2711_v27 = vpop.eup %2710 }
 0x658   : > { %2107 = vst.msk [vmem:[%s3674_s9] sm:$0xff] %vm554_vm1, %v2099_v46  ;;  %v2100_v51 = vadd.f32 %v2092_v2, %v3419_v56  ;;  %v2713_v58 = vpop.eup %2712 }
 0x659   : > { %2110 = vst.msk [vmem:[%s3674_s9 + $0x18] sm:$0xff] %vm554_vm1, %v2102_v29  ;;  %v2715_v28 = vpop.eup %2714 }
 0x65a   : > { %2108 = vst.msk [vmem:[%s3674_s9 + $0x8] sm:$0xff] %vm554_vm1, %v2100_v51 }
 0x662   : > { %v2498_v40 = vpop.f32.mrb[24].mxu0 }
 0x663   : > { %v2097_v12 = vmul.f32 %v2709_v54, %v2498_v40  ;;  %v2076_v44 = vpop.f32.mrb[25].mxu0 }
 0x664   : > { %v2095_v56 = vmul.f32 %v2711_v27, %v2076_v44  ;;  %v2499_v25 = vpop.f32.mrb[26].mxu0 }
 0x665   : > { %v2105_v43 = vadd.f32 %v2097_v12, %v3442_v33  ;;  %v2098_v30 = vmul.f32 %v2713_v58, %v2499_v25  ;;  %v2079_v52 = vpop.f32.mrb[27].mxu0 }
 0x666   : > { %v2103_v1 = vadd.f32 %v2095_v56, %v3437_v6  ;;  %v2096_v13 = vmul.f32 %v2715_v28, %v2079_v52 }
 0x667   : > { %2113 = vst.msk [vmem:[%s3674_s9 + $0x30] sm:$0xff] %vm554_vm1, %v2105_v43  ;;  %v2106_v18 = vadd.f32 %v2098_v30, %v3454_v32 }
 0x668   : > { %2111 = vst.msk [vmem:[%s3674_s9 + $0x20] sm:$0xff] %vm554_vm1, %v2103_v1  ;;  %v2104_v47 = vadd.f32 %v2096_v13, %v3447_v22 }
 0x669   : > { %2114 = vst.msk [vmem:[%s3674_s9 + $0x38] sm:$0xff] %vm554_vm1, %v2106_v18 }
 0x66a   : > { %2112 = vst.msk [vmem:[%s3674_s9 + $0x28] sm:$0xff] %vm554_vm1, %v2104_v47 }
 0x66b PF: > { %s19_s11 = sadd.s32 1, %s2748_s11   ;;  %s3679_s30 = smov %s2744_s10 }
 0x66c   : > { %p16_p6 = scmp.ge.s32.totalorder %s19_s11, 4   ;;  %s3680_s10 = smov %s3682_s12 }
 0x66e   :  { %18 = sbr.rel (!%p16_p6) target bundleno = 3 (0x3), region = 128 }

</bundles_post_ra>
